<compile_context>
chip_gen: v7x
topology: tpu7x:2x2x1
jax: 0.10.0
libtpu: 0.0.40
codegen_flags: <defaults>
</compile_context>

<pallas_src>
import functools

import jax
import jax.numpy as jnp
from jax import lax
from jax.experimental import pallas as pl
from jax.experimental.pallas import tpu as pltpu


def _mhsa_kernel(x_kv_ref, x_q_ref, wq_ref, wkv_ref, w0_ref, o_ref,
                 kv_sc, ctx_sc, *, heads, dh):
    """Grid = (B, T // tq); one (batch, query-tile) per step.

    x_kv_ref : (1, T,  D)   bf16  full-sequence input (resident across q-tiles)
    x_q_ref  : (1, tq, D)   bf16  query-tile rows of the same input
    wq_ref   : (D, H*Dh)    bf16  Q projection, softmax scale pre-folded
    wkv_ref  : (D, 2*H*Dh)  bf16  fused K/V projection, cols ordered (head,{k,v},d)
    w0_ref   : (H*Dh, D)    bf16  output projection, rows ordered (head, d)
    o_ref    : (1, tq, D)   f32   output block
    kv_sc    : (T, 2*H*Dh)  bf16  K/V for the whole sequence (filled at qi == 0)
    ctx_sc   : (tq, H*Dh)   bf16  per-head attention outputs at lane offset h*Dh
    """
    qi = pl.program_id(1)

    # (1) K/V projection for the full sequence, once per batch element.
    #     Scratch persists across the (sequential, "arbitrary") qi axis.
    @pl.when(qi == 0)
    def _():
        kv_sc[...] = jnp.dot(x_kv_ref[0], wkv_ref[...],
                             preferred_element_type=jnp.float32).astype(jnp.bfloat16)

    # (2) Q projection for this query tile (1/sqrt(Dh) pre-folded into wq).
    q_all = jnp.dot(x_q_ref[0], wq_ref[...],
                    preferred_element_type=jnp.float32).astype(jnp.bfloat16)  # (tq, H*Dh)

    # (3) Per-head attention.  heads is a small static int -> static unroll, so
    #     every slice below is a static lane slice (no repack scratch needed).
    for h in range(heads):
        q = q_all[:, h * dh:(h + 1) * dh]                       # (tq, Dh) bf16
        k = kv_sc[:, 2 * h * dh:(2 * h + 1) * dh]               # (T,  Dh) bf16
        v = kv_sc[:, (2 * h + 1) * dh:(2 * h + 2) * dh]         # (T,  Dh) bf16

        # s[i, j] = sum_d q[i, d] * k[j, d]   (bf16 MXU operands, f32 accumulate)
        s = lax.dot_general(q, k, (((1,), (1,)), ((), ())),
                            preferred_element_type=jnp.float32)  # (tq, T) f32
        # Softmax stays f32 (no bf16 VPU/EUP on v5e); divide -> EUP reciprocal.
        s = s - jnp.max(s, axis=-1, keepdims=True)
        e = jnp.exp(s)
        p = e * pl.reciprocal(jnp.sum(e, axis=-1, keepdims=True), approx=True)

        # Single bf16 cast per head; written once at its static lane offset.
        ctx_sc[:, h * dh:(h + 1) * dh] = jnp.dot(
            p.astype(jnp.bfloat16), v,
            preferred_element_type=jnp.float32).astype(jnp.bfloat16)

    # (4) ONE fused output projection (K = H*Dh) and a single lane-dense store.
    o_ref[0] = jnp.dot(ctx_sc[...], w0_ref[...],
                       preferred_element_type=jnp.float32).astype(o_ref.dtype)


def mhsa_pallas(x, w_qkv, w_0, heads, *, tq=None):
    """x: (B, T, D); w_qkv: (3*H*Dh, D) [nn.Linear weight]; w_0: (D, H*Dh)."""
    B, T, D = x.shape
    dh = w_qkv.shape[0] // (3 * heads)
    hd = heads * dh
    scale = float(dh) ** -0.5

    if tq is None:
        tq = T if T <= 128 else 128            # query-tile rows per grid step
    assert T % tq == 0 and (tq == T or tq % 8 == 0)
    nq = T // tq

    # einops 'b t (d k h) -> k b h t d' means QKV feature r = d*3*H + kind*H + h.
    # Repack into right-multiplied weights with columns ordered (head, kind, d);
    # fold the softmax scale into the Q weight.
    w = w_qkv.reshape(dh, 3, heads, D)                     # [d, kind, h, D]
    w = jnp.transpose(w, (3, 2, 1, 0))                     # [D, h, kind, d]
    wq = (w[:, :, 0, :] * scale).reshape(D, hd).astype(jnp.bfloat16)   # (D, H*Dh)
    wkv = w[:, :, 1:, :].reshape(D, 2 * hd).astype(jnp.bfloat16)       # (D, 2*H*Dh)

    # 'b h t d -> b t (h d)' then W_0: one (H*Dh, D) right-multiplied weight,
    # rows ordered (head, d) to match the ctx scratch layout.
    w0p = w_0.T.astype(jnp.bfloat16)

    xb = x.astype(jnp.bfloat16)    # halve activation DMA; kernel needs bf16 anyway

    kernel = functools.partial(_mhsa_kernel, heads=heads, dh=dh)
    return pl.pallas_call(
        kernel,
        out_shape=jax.ShapeDtypeStruct((B, T, D), x.dtype),
        grid_spec=pltpu.PrefetchScalarGridSpec(
            num_scalar_prefetch=0,
            grid=(B, nq),
            in_specs=[
                pl.BlockSpec((1, T, D), lambda b, qi: (b, 0, 0)),    # full seq (K/V)
                pl.BlockSpec((1, tq, D), lambda b, qi: (b, qi, 0)),  # query tile
                pl.BlockSpec((D, hd), lambda b, qi: (0, 0)),         # resident weights
                pl.BlockSpec((D, 2 * hd), lambda b, qi: (0, 0)),
                pl.BlockSpec((hd, D), lambda b, qi: (0, 0)),
            ],
            out_specs=pl.BlockSpec((1, tq, D), lambda b, qi: (b, qi, 0)),
            scratch_shapes=[
                pltpu.VMEM((T, 2 * hd), jnp.bfloat16),   # K/V, persists across qi
                pltpu.VMEM((tq, hd), jnp.bfloat16),      # lane-packed head outputs
            ],
        ),
        compiler_params=pltpu.CompilerParams(
            # b parallel (megacore), qi sequential (kv_sc carried across q-tiles).
            dimension_semantics=("parallel", "arbitrary"),
            # Re-derive with tq for each generation (v7x has 64 MiB physical VMEM).
            vmem_limit_bytes=32 * 1024 * 1024,
        ),
    )(xb, xb, wq, wkv, w0p)


def mhsa_ref(x, w_qkv, w_0, heads, operand_dtype=jnp.float32):
    """Pure-JAX transcription of the PyTorch forward (mask=None).

    operand_dtype=jnp.bfloat16 emulates the kernel's bf16 MXU operands (round
    every matmul operand, accumulate in f32) so the comparison isolates the
    kernel's indexing / weight-repack logic from bf16 rounding.
    """
    B, T, D = x.shape
    dh = w_qkv.shape[0] // (3 * heads)
    c = lambda a: a.astype(operand_dtype).astype(jnp.float32)
    with jax.default_matmul_precision("float32"):
        qkv = c(x) @ c(w_qkv).T                             # (B, T, 3*H*Dh)
        r = qkv.reshape(B, T, dh, 3, heads)                 # 'b t (d k h)'
        q = jnp.transpose(r[:, :, :, 0, :], (0, 3, 1, 2))   # (B, H, T, Dh)
        k = jnp.transpose(r[:, :, :, 1, :], (0, 3, 1, 2))
        v = jnp.transpose(r[:, :, :, 2, :], (0, 3, 1, 2))
        s = jnp.einsum('bhid,bhjd->bhij', c(q), c(k)) * (float(dh) ** -0.5)
        a = jax.nn.softmax(s, axis=-1)
        o = jnp.einsum('bhij,bhjd->bhid', c(a), c(v))
        o = jnp.transpose(o, (0, 2, 1, 3)).reshape(B, T, heads * dh)
        return c(o) @ c(w_0).T


def _run_case(key, B, T, dim, heads, tq=None, tol=2e-2):
    dim_head = dim // heads                     # __init__ default: int(dim / heads)
    _dim = dim_head * heads
    k1, k2, k3 = jax.random.split(key, 3)
    x = jax.random.normal(k1, (B, T, dim), dtype=jnp.float32)
    w_qkv = jax.random.normal(k2, (_dim * 3, dim), dtype=jnp.float32) * (dim ** -0.5)
    w_0 = jax.random.normal(k3, (dim, _dim), dtype=jnp.float32) * (_dim ** -0.5)

    out = mhsa_pallas(x, w_qkv, w_0, heads, tq=tq)
    jax.block_until_ready(out)

    # Compare against a reference with bf16-rounded matmul operands; tolerance
    # covers f32 accumulation order, scale-folded-into-bf16-q, and the approx
    # EUP reciprocal.
    ref = mhsa_ref(x, w_qkv, w_0, heads, operand_dtype=jnp.bfloat16)
    assert out.shape == (B, T, dim)
    max_err = float(jnp.max(jnp.abs(out - ref)))
    assert jnp.allclose(out, ref, atol=tol, rtol=tol), max_err
    return max_err


if __name__ == "__main__":
    key = jax.random.PRNGKey(0)
    k_a, k_b = jax.random.split(key)

    # Toy config matching the module example (single query tile per batch elem).
    _run_case(k_a, B=2, T=8, dim=32, heads=8)

    # Slightly larger config exercising the query-tile axis (nq = 2) and the
    # pl.when(qi == 0) K/V-scratch reuse path.
    _run_case(k_b, B=2, T=128, dim=128, heads=8, tq=64)

    print("KERNEL_OK")
</pallas_src>

<mosaic_0001>
module attributes {stable_mosaic.version = 11 : i64} {
  func.func @_mhsa_kernel(%arg0: i32, %arg1: i32, %arg2: memref<1x8x32xbf16, #tpu.memory_space<vmem>>, %arg3: memref<1x8x32xbf16, #tpu.memory_space<vmem>>, %arg4: memref<32x32xbf16, #tpu.memory_space<vmem>>, %arg5: memref<32x64xbf16, #tpu.memory_space<vmem>>, %arg6: memref<32x32xbf16, #tpu.memory_space<vmem>>, %arg7: memref<1x8x32xf32, #tpu.memory_space<vmem>>, %arg8: memref<8x64xbf16, #tpu.memory_space<vmem>>, %arg9: memref<8x32xbf16, #tpu.memory_space<vmem>>) attributes {dimension_semantics = [#tpu.dimension_semantics<parallel>, #tpu.dimension_semantics<arbitrary>], iteration_bounds = array<i64: 2, 1>, scalar_prefetch = 0 : i64, scratch_operands = 2 : i64, tpu.core_type = #tpu.core_type<tc>, window_params = [{transform_indices = @transform_0, window_bounds = array<i64: 1, 8, 32>}, {transform_indices = @transform_1, window_bounds = array<i64: 1, 8, 32>}, {pipeline_mode = #tpu.pipeline_mode<synchronous>, transform_indices = @transform_2, window_bounds = array<i64: 32, 32>}, {pipeline_mode = #tpu.pipeline_mode<synchronous>, transform_indices = @transform_3, window_bounds = array<i64: 32, 64>}, {pipeline_mode = #tpu.pipeline_mode<synchronous>, transform_indices = @transform_4, window_bounds = array<i64: 32, 32>}, {transform_indices = @transform_5, window_bounds = array<i64: 1, 8, 32>}]} {
    %c0_i32 = arith.constant 0 : i32
    %0 = arith.cmpi eq, %arg1, %c0_i32 : i32
    %1 = arith.extui %0 : i1 to i32
    %c0_i32_0 = arith.constant 0 : i32
    %2 = arith.cmpi ne, %1, %c0_i32_0 : i32
    scf.if %2 {
      %c0_78 = arith.constant 0 : index
      %c0_79 = arith.constant 0 : index
      %c0_80 = arith.constant 0 : index
      %158 = vector.load %arg2[%c0_78, %c0_79, %c0_80] : memref<1x8x32xbf16, #tpu.memory_space<vmem>>, vector<1x8x32xbf16>
      %159 = vector.shape_cast %158 : vector<1x8x32xbf16> to vector<8x32xbf16>
      %c0_81 = arith.constant 0 : index
      %c0_82 = arith.constant 0 : index
      %160 = vector.load %arg5[%c0_81, %c0_82] : memref<32x64xbf16, #tpu.memory_space<vmem>>, vector<32x64xbf16>
      %cst_83 = arith.constant dense<0.000000e+00> : vector<8x64xf32>
      %161 = tpu.matmul %159, %160, %cst_83 {dimension_numbers = #tpu.dot_dimension_numbers<[1], [0], [0], [1], [0, 0, 1, 1], [], []>} : vector<8x32xbf16>, vector<32x64xbf16>, vector<8x64xf32> -> vector<8x64xf32>
      %162 = arith.truncf %161 : vector<8x64xf32> to vector<8x64xbf16>
      %c0_84 = arith.constant 0 : index
      %c0_85 = arith.constant 0 : index
      %163 = vector.load %arg8[%c0_84, %c0_85] : memref<8x64xbf16, #tpu.memory_space<vmem>>, vector<8x64xbf16>
      tpu.vector_store %arg8[%c0_84, %c0_85], %162 {strides = array<i32>} : memref<8x64xbf16, #tpu.memory_space<vmem>>, vector<8x64xbf16>,
    } else {
    }
    %c0 = arith.constant 0 : index
    %c0_1 = arith.constant 0 : index
    %c0_2 = arith.constant 0 : index
    %3 = vector.load %arg3[%c0, %c0_1, %c0_2] : memref<1x8x32xbf16, #tpu.memory_space<vmem>>, vector<1x8x32xbf16>
    %4 = vector.shape_cast %3 : vector<1x8x32xbf16> to vector<8x32xbf16>
    %c0_3 = arith.constant 0 : index
    %c0_4 = arith.constant 0 : index
    %5 = vector.load %arg4[%c0_3, %c0_4] : memref<32x32xbf16, #tpu.memory_space<vmem>>, vector<32x32xbf16>
    %cst = arith.constant dense<0.000000e+00> : vector<8x32xf32>
    %6 = tpu.matmul %4, %5, %cst {dimension_numbers = #tpu.dot_dimension_numbers<[1], [0], [0], [1], [0, 0, 1, 1], [], []>} : vector<8x32xbf16>, vector<32x32xbf16>, vector<8x32xf32> -> vector<8x32xf32>
    %7 = arith.truncf %6 : vector<8x32xf32> to vector<8x32xbf16>
    %8 = vector.extract_strided_slice %7 {offsets = [0, 0], sizes = [8, 4], strides = [1, 1]} : vector<8x32xbf16> to vector<8x4xbf16>
    %c0_5 = arith.constant 0 : index
    %c0_6 = arith.constant 0 : index
    %9 = vector.load %arg8[%c0_5, %c0_6] : memref<8x64xbf16, #tpu.memory_space<vmem>>, vector<8x4xbf16>
    %c0_7 = arith.constant 0 : index
    %c4 = arith.constant 4 : index
    %10 = vector.load %arg8[%c0_7, %c4] : memref<8x64xbf16, #tpu.memory_space<vmem>>, vector<8x4xbf16>
    %cst_8 = arith.constant dense<0.000000e+00> : vector<8x8xf32>
    %11 = tpu.matmul %8, %9, %cst_8 {dimension_numbers = #tpu.dot_dimension_numbers<[1], [1], [0], [0], [0, 0, 1, 0], [], []>} : vector<8x4xbf16>, vector<8x4xbf16>, vector<8x8xf32> -> vector<8x8xf32>
    %cst_9 = arith.constant dense<0xFF800000> : vector<8xf32>
    %12 = vector.multi_reduction <maximumf>, %11, %cst_9 [1] : vector<8x8xf32> to vector<8xf32>
    %13 = vector.shape_cast %12 : vector<8xf32> to vector<8x1xf32>
    %14 = vector.broadcast %13 : vector<8x1xf32> to vector<8x8xf32>
    %15 = arith.subf %11, %14 : vector<8x8xf32>
    %16 = math.exp %15 : vector<8x8xf32>
    %cst_10 = arith.constant dense<0.000000e+00> : vector<8xf32>
    %17 = vector.multi_reduction <add>, %16, %cst_10 [1] : vector<8x8xf32> to vector<8xf32>
    %18 = vector.shape_cast %17 : vector<8xf32> to vector<8x1xf32>
    %19 = tpu.reciprocal %18 {approx = true} : vector<8x1xf32> -> vector<8x1xf32>
    %20 = vector.broadcast %19 : vector<8x1xf32> to vector<8x8xf32>
    %21 = arith.mulf %16, %20 : vector<8x8xf32>
    %22 = arith.truncf %21 : vector<8x8xf32> to vector<8x8xbf16>
    %cst_11 = arith.constant dense<0.000000e+00> : vector<8x4xf32>
    %23 = tpu.matmul %22, %10, %cst_11 {dimension_numbers = #tpu.dot_dimension_numbers<[1], [0], [0], [1], [0, 0, 1, 1], [], []>} : vector<8x8xbf16>, vector<8x4xbf16>, vector<8x4xf32> -> vector<8x4xf32>
    %24 = arith.truncf %23 : vector<8x4xf32> to vector<8x4xbf16>
    %c0_12 = arith.constant 0 : index
    %c0_13 = arith.constant 0 : index
    %25 = vector.load %arg9[%c0_12, %c0_13] : memref<8x32xbf16, #tpu.memory_space<vmem>>, vector<8x4xbf16>
    tpu.vector_store %arg9[%c0_12, %c0_13], %24 {strides = array<i32>} : memref<8x32xbf16, #tpu.memory_space<vmem>>, vector<8x4xbf16>,
    %26 = vector.extract_strided_slice %7 {offsets = [0, 4], sizes = [8, 4], strides = [1, 1]} : vector<8x32xbf16> to vector<8x4xbf16>
    %c0_14 = arith.constant 0 : index
    %c8 = arith.constant 8 : index
    %27 = vector.load %arg8[%c0_14, %c8] : memref<8x64xbf16, #tpu.memory_space<vmem>>, vector<8x4xbf16>
    %c0_15 = arith.constant 0 : index
    %c12 = arith.constant 12 : index
    %28 = vector.load %arg8[%c0_15, %c12] : memref<8x64xbf16, #tpu.memory_space<vmem>>, vector<8x4xbf16>
    %cst_16 = arith.constant dense<0.000000e+00> : vector<8x8xf32>
    %29 = tpu.matmul %26, %27, %cst_16 {dimension_numbers = #tpu.dot_dimension_numbers<[1], [1], [0], [0], [0, 0, 1, 0], [], []>} : vector<8x4xbf16>, vector<8x4xbf16>, vector<8x8xf32> -> vector<8x8xf32>
    %cst_17 = arith.constant dense<0xFF800000> : vector<8xf32>
    %30 = vector.multi_reduction <maximumf>, %29, %cst_17 [1] : vector<8x8xf32> to vector<8xf32>
    %31 = vector.shape_cast %30 : vector<8xf32> to vector<8x1xf32>
    %32 = vector.broadcast %31 : vector<8x1xf32> to vector<8x8xf32>
    %33 = arith.subf %29, %32 : vector<8x8xf32>
    %34 = math.exp %33 : vector<8x8xf32>
    %cst_18 = arith.constant dense<0.000000e+00> : vector<8xf32>
    %35 = vector.multi_reduction <add>, %34, %cst_18 [1] : vector<8x8xf32> to vector<8xf32>
    %36 = vector.shape_cast %35 : vector<8xf32> to vector<8x1xf32>
    %37 = tpu.reciprocal %36 {approx = true} : vector<8x1xf32> -> vector<8x1xf32>
    %38 = vector.broadcast %37 : vector<8x1xf32> to vector<8x8xf32>
    %39 = arith.mulf %34, %38 : vector<8x8xf32>
    %40 = arith.truncf %39 : vector<8x8xf32> to vector<8x8xbf16>
    %cst_19 = arith.constant dense<0.000000e+00> : vector<8x4xf32>
    %41 = tpu.matmul %40, %28, %cst_19 {dimension_numbers = #tpu.dot_dimension_numbers<[1], [0], [0], [1], [0, 0, 1, 1], [], []>} : vector<8x8xbf16>, vector<8x4xbf16>, vector<8x4xf32> -> vector<8x4xf32>
    %42 = arith.truncf %41 : vector<8x4xf32> to vector<8x4xbf16>
    %c0_20 = arith.constant 0 : index
    %c4_21 = arith.constant 4 : index
    %43 = vector.load %arg9[%c0_20, %c4_21] : memref<8x32xbf16, #tpu.memory_space<vmem>>, vector<8x4xbf16>
    tpu.vector_store %arg9[%c0_20, %c4_21], %42 {strides = array<i32>} : memref<8x32xbf16, #tpu.memory_space<vmem>>, vector<8x4xbf16>,
    %44 = vector.extract_strided_slice %7 {offsets = [0, 8], sizes = [8, 4], strides = [1, 1]} : vector<8x32xbf16> to vector<8x4xbf16>
    %c0_22 = arith.constant 0 : index
    %c16 = arith.constant 16 : index
    %45 = vector.load %arg8[%c0_22, %c16] : memref<8x64xbf16, #tpu.memory_space<vmem>>, vector<8x4xbf16>
    %c0_23 = arith.constant 0 : index
    %c20 = arith.constant 20 : index
    %46 = vector.load %arg8[%c0_23, %c20] : memref<8x64xbf16, #tpu.memory_space<vmem>>, vector<8x4xbf16>
    %cst_24 = arith.constant dense<0.000000e+00> : vector<8x8xf32>
    %47 = tpu.matmul %44, %45, %cst_24 {dimension_numbers = #tpu.dot_dimension_numbers<[1], [1], [0], [0], [0, 0, 1, 0], [], []>} : vector<8x4xbf16>, vector<8x4xbf16>, vector<8x8xf32> -> vector<8x8xf32>
    %cst_25 = arith.constant dense<0xFF800000> : vector<8xf32>
    %48 = vector.multi_reduction <maximumf>, %47, %cst_25 [1] : vector<8x8xf32> to vector<8xf32>
    %49 = vector.shape_cast %48 : vector<8xf32> to vector<8x1xf32>
    %50 = vector.broadcast %49 : vector<8x1xf32> to vector<8x8xf32>
    %51 = arith.subf %47, %50 : vector<8x8xf32>
    %52 = math.exp %51 : vector<8x8xf32>
    %cst_26 = arith.constant dense<0.000000e+00> : vector<8xf32>
    %53 = vector.multi_reduction <add>, %52, %cst_26 [1] : vector<8x8xf32> to vector<8xf32>
    %54 = vector.shape_cast %53 : vector<8xf32> to vector<8x1xf32>
    %55 = tpu.reciprocal %54 {approx = true} : vector<8x1xf32> -> vector<8x1xf32>
    %56 = vector.broadcast %55 : vector<8x1xf32> to vector<8x8xf32>
    %57 = arith.mulf %52, %56 : vector<8x8xf32>
    %58 = arith.truncf %57 : vector<8x8xf32> to vector<8x8xbf16>
    %cst_27 = arith.constant dense<0.000000e+00> : vector<8x4xf32>
    %59 = tpu.matmul %58, %46, %cst_27 {dimension_numbers = #tpu.dot_dimension_numbers<[1], [0], [0], [1], [0, 0, 1, 1], [], []>} : vector<8x8xbf16>, vector<8x4xbf16>, vector<8x4xf32> -> vector<8x4xf32>
    %60 = arith.truncf %59 : vector<8x4xf32> to vector<8x4xbf16>
    %c0_28 = arith.constant 0 : index
    %c8_29 = arith.constant 8 : index
    %61 = vector.load %arg9[%c0_28, %c8_29] : memref<8x32xbf16, #tpu.memory_space<vmem>>, vector<8x4xbf16>
    tpu.vector_store %arg9[%c0_28, %c8_29], %60 {strides = array<i32>} : memref<8x32xbf16, #tpu.memory_space<vmem>>, vector<8x4xbf16>,
    %62 = vector.extract_strided_slice %7 {offsets = [0, 12], sizes = [8, 4], strides = [1, 1]} : vector<8x32xbf16> to vector<8x4xbf16>
    %c0_30 = arith.constant 0 : index
    %c24 = arith.constant 24 : index
    %63 = vector.load %arg8[%c0_30, %c24] : memref<8x64xbf16, #tpu.memory_space<vmem>>, vector<8x4xbf16>
    %c0_31 = arith.constant 0 : index
    %c28 = arith.constant 28 : index
    %64 = vector.load %arg8[%c0_31, %c28] : memref<8x64xbf16, #tpu.memory_space<vmem>>, vector<8x4xbf16>
    %cst_32 = arith.constant dense<0.000000e+00> : vector<8x8xf32>
    %65 = tpu.matmul %62, %63, %cst_32 {dimension_numbers = #tpu.dot_dimension_numbers<[1], [1], [0], [0], [0, 0, 1, 0], [], []>} : vector<8x4xbf16>, vector<8x4xbf16>, vector<8x8xf32> -> vector<8x8xf32>
    %cst_33 = arith.constant dense<0xFF800000> : vector<8xf32>
    %66 = vector.multi_reduction <maximumf>, %65, %cst_33 [1] : vector<8x8xf32> to vector<8xf32>
    %67 = vector.shape_cast %66 : vector<8xf32> to vector<8x1xf32>
    %68 = vector.broadcast %67 : vector<8x1xf32> to vector<8x8xf32>
    %69 = arith.subf %65, %68 : vector<8x8xf32>
    %70 = math.exp %69 : vector<8x8xf32>
    %cst_34 = arith.constant dense<0.000000e+00> : vector<8xf32>
    %71 = vector.multi_reduction <add>, %70, %cst_34 [1] : vector<8x8xf32> to vector<8xf32>
    %72 = vector.shape_cast %71 : vector<8xf32> to vector<8x1xf32>
    %73 = tpu.reciprocal %72 {approx = true} : vector<8x1xf32> -> vector<8x1xf32>
    %74 = vector.broadcast %73 : vector<8x1xf32> to vector<8x8xf32>
    %75 = arith.mulf %70, %74 : vector<8x8xf32>
    %76 = arith.truncf %75 : vector<8x8xf32> to vector<8x8xbf16>
    %cst_35 = arith.constant dense<0.000000e+00> : vector<8x4xf32>
    %77 = tpu.matmul %76, %64, %cst_35 {dimension_numbers = #tpu.dot_dimension_numbers<[1], [0], [0], [1], [0, 0, 1, 1], [], []>} : vector<8x8xbf16>, vector<8x4xbf16>, vector<8x4xf32> -> vector<8x4xf32>
    %78 = arith.truncf %77 : vector<8x4xf32> to vector<8x4xbf16>
    %c0_36 = arith.constant 0 : index
    %c12_37 = arith.constant 12 : index
    %79 = vector.load %arg9[%c0_36, %c12_37] : memref<8x32xbf16, #tpu.memory_space<vmem>>, vector<8x4xbf16>
    tpu.vector_store %arg9[%c0_36, %c12_37], %78 {strides = array<i32>} : memref<8x32xbf16, #tpu.memory_space<vmem>>, vector<8x4xbf16>,
    %80 = vector.extract_strided_slice %7 {offsets = [0, 16], sizes = [8, 4], strides = [1, 1]} : vector<8x32xbf16> to vector<8x4xbf16>
    %c0_38 = arith.constant 0 : index
    %c32 = arith.constant 32 : index
    %81 = vector.load %arg8[%c0_38, %c32] : memref<8x64xbf16, #tpu.memory_space<vmem>>, vector<8x4xbf16>
    %c0_39 = arith.constant 0 : index
    %c36 = arith.constant 36 : index
    %82 = vector.load %arg8[%c0_39, %c36] : memref<8x64xbf16, #tpu.memory_space<vmem>>, vector<8x4xbf16>
    %cst_40 = arith.constant dense<0.000000e+00> : vector<8x8xf32>
    %83 = tpu.matmul %80, %81, %cst_40 {dimension_numbers = #tpu.dot_dimension_numbers<[1], [1], [0], [0], [0, 0, 1, 0], [], []>} : vector<8x4xbf16>, vector<8x4xbf16>, vector<8x8xf32> -> vector<8x8xf32>
    %cst_41 = arith.constant dense<0xFF800000> : vector<8xf32>
    %84 = vector.multi_reduction <maximumf>, %83, %cst_41 [1] : vector<8x8xf32> to vector<8xf32>
    %85 = vector.shape_cast %84 : vector<8xf32> to vector<8x1xf32>
    %86 = vector.broadcast %85 : vector<8x1xf32> to vector<8x8xf32>
    %87 = arith.subf %83, %86 : vector<8x8xf32>
    %88 = math.exp %87 : vector<8x8xf32>
    %cst_42 = arith.constant dense<0.000000e+00> : vector<8xf32>
    %89 = vector.multi_reduction <add>, %88, %cst_42 [1] : vector<8x8xf32> to vector<8xf32>
    %90 = vector.shape_cast %89 : vector<8xf32> to vector<8x1xf32>
    %91 = tpu.reciprocal %90 {approx = true} : vector<8x1xf32> -> vector<8x1xf32>
    %92 = vector.broadcast %91 : vector<8x1xf32> to vector<8x8xf32>
    %93 = arith.mulf %88, %92 : vector<8x8xf32>
    %94 = arith.truncf %93 : vector<8x8xf32> to vector<8x8xbf16>
    %cst_43 = arith.constant dense<0.000000e+00> : vector<8x4xf32>
    %95 = tpu.matmul %94, %82, %cst_43 {dimension_numbers = #tpu.dot_dimension_numbers<[1], [0], [0], [1], [0, 0, 1, 1], [], []>} : vector<8x8xbf16>, vector<8x4xbf16>, vector<8x4xf32> -> vector<8x4xf32>
    %96 = arith.truncf %95 : vector<8x4xf32> to vector<8x4xbf16>
    %c0_44 = arith.constant 0 : index
    %c16_45 = arith.constant 16 : index
    %97 = vector.load %arg9[%c0_44, %c16_45] : memref<8x32xbf16, #tpu.memory_space<vmem>>, vector<8x4xbf16>
    tpu.vector_store %arg9[%c0_44, %c16_45], %96 {strides = array<i32>} : memref<8x32xbf16, #tpu.memory_space<vmem>>, vector<8x4xbf16>,
    %98 = vector.extract_strided_slice %7 {offsets = [0, 20], sizes = [8, 4], strides = [1, 1]} : vector<8x32xbf16> to vector<8x4xbf16>
    %c0_46 = arith.constant 0 : index
    %c40 = arith.constant 40 : index
    %99 = vector.load %arg8[%c0_46, %c40] : memref<8x64xbf16, #tpu.memory_space<vmem>>, vector<8x4xbf16>
    %c0_47 = arith.constant 0 : index
    %c44 = arith.constant 44 : index
    %100 = vector.load %arg8[%c0_47, %c44] : memref<8x64xbf16, #tpu.memory_space<vmem>>, vector<8x4xbf16>
    %cst_48 = arith.constant dense<0.000000e+00> : vector<8x8xf32>
    %101 = tpu.matmul %98, %99, %cst_48 {dimension_numbers = #tpu.dot_dimension_numbers<[1], [1], [0], [0], [0, 0, 1, 0], [], []>} : vector<8x4xbf16>, vector<8x4xbf16>, vector<8x8xf32> -> vector<8x8xf32>
    %cst_49 = arith.constant dense<0xFF800000> : vector<8xf32>
    %102 = vector.multi_reduction <maximumf>, %101, %cst_49 [1] : vector<8x8xf32> to vector<8xf32>
    %103 = vector.shape_cast %102 : vector<8xf32> to vector<8x1xf32>
    %104 = vector.broadcast %103 : vector<8x1xf32> to vector<8x8xf32>
    %105 = arith.subf %101, %104 : vector<8x8xf32>
    %106 = math.exp %105 : vector<8x8xf32>
    %cst_50 = arith.constant dense<0.000000e+00> : vector<8xf32>
    %107 = vector.multi_reduction <add>, %106, %cst_50 [1] : vector<8x8xf32> to vector<8xf32>
    %108 = vector.shape_cast %107 : vector<8xf32> to vector<8x1xf32>
    %109 = tpu.reciprocal %108 {approx = true} : vector<8x1xf32> -> vector<8x1xf32>
    %110 = vector.broadcast %109 : vector<8x1xf32> to vector<8x8xf32>
    %111 = arith.mulf %106, %110 : vector<8x8xf32>
    %112 = arith.truncf %111 : vector<8x8xf32> to vector<8x8xbf16>
    %cst_51 = arith.constant dense<0.000000e+00> : vector<8x4xf32>
    %113 = tpu.matmul %112, %100, %cst_51 {dimension_numbers = #tpu.dot_dimension_numbers<[1], [0], [0], [1], [0, 0, 1, 1], [], []>} : vector<8x8xbf16>, vector<8x4xbf16>, vector<8x4xf32> -> vector<8x4xf32>
    %114 = arith.truncf %113 : vector<8x4xf32> to vector<8x4xbf16>
    %c0_52 = arith.constant 0 : index
    %c20_53 = arith.constant 20 : index
    %115 = vector.load %arg9[%c0_52, %c20_53] : memref<8x32xbf16, #tpu.memory_space<vmem>>, vector<8x4xbf16>
    tpu.vector_store %arg9[%c0_52, %c20_53], %114 {strides = array<i32>} : memref<8x32xbf16, #tpu.memory_space<vmem>>, vector<8x4xbf16>,
    %116 = vector.extract_strided_slice %7 {offsets = [0, 24], sizes = [8, 4], strides = [1, 1]} : vector<8x32xbf16> to vector<8x4xbf16>
    %c0_54 = arith.constant 0 : index
    %c48 = arith.constant 48 : index
    %117 = vector.load %arg8[%c0_54, %c48] : memref<8x64xbf16, #tpu.memory_space<vmem>>, vector<8x4xbf16>
    %c0_55 = arith.constant 0 : index
    %c52 = arith.constant 52 : index
    %118 = vector.load %arg8[%c0_55, %c52] : memref<8x64xbf16, #tpu.memory_space<vmem>>, vector<8x4xbf16>
    %cst_56 = arith.constant dense<0.000000e+00> : vector<8x8xf32>
    %119 = tpu.matmul %116, %117, %cst_56 {dimension_numbers = #tpu.dot_dimension_numbers<[1], [1], [0], [0], [0, 0, 1, 0], [], []>} : vector<8x4xbf16>, vector<8x4xbf16>, vector<8x8xf32> -> vector<8x8xf32>
    %cst_57 = arith.constant dense<0xFF800000> : vector<8xf32>
    %120 = vector.multi_reduction <maximumf>, %119, %cst_57 [1] : vector<8x8xf32> to vector<8xf32>
    %121 = vector.shape_cast %120 : vector<8xf32> to vector<8x1xf32>
    %122 = vector.broadcast %121 : vector<8x1xf32> to vector<8x8xf32>
    %123 = arith.subf %119, %122 : vector<8x8xf32>
    %124 = math.exp %123 : vector<8x8xf32>
    %cst_58 = arith.constant dense<0.000000e+00> : vector<8xf32>
    %125 = vector.multi_reduction <add>, %124, %cst_58 [1] : vector<8x8xf32> to vector<8xf32>
    %126 = vector.shape_cast %125 : vector<8xf32> to vector<8x1xf32>
    %127 = tpu.reciprocal %126 {approx = true} : vector<8x1xf32> -> vector<8x1xf32>
    %128 = vector.broadcast %127 : vector<8x1xf32> to vector<8x8xf32>
    %129 = arith.mulf %124, %128 : vector<8x8xf32>
    %130 = arith.truncf %129 : vector<8x8xf32> to vector<8x8xbf16>
    %cst_59 = arith.constant dense<0.000000e+00> : vector<8x4xf32>
    %131 = tpu.matmul %130, %118, %cst_59 {dimension_numbers = #tpu.dot_dimension_numbers<[1], [0], [0], [1], [0, 0, 1, 1], [], []>} : vector<8x8xbf16>, vector<8x4xbf16>, vector<8x4xf32> -> vector<8x4xf32>
    %132 = arith.truncf %131 : vector<8x4xf32> to vector<8x4xbf16>
    %c0_60 = arith.constant 0 : index
    %c24_61 = arith.constant 24 : index
    %133 = vector.load %arg9[%c0_60, %c24_61] : memref<8x32xbf16, #tpu.memory_space<vmem>>, vector<8x4xbf16>
    tpu.vector_store %arg9[%c0_60, %c24_61], %132 {strides = array<i32>} : memref<8x32xbf16, #tpu.memory_space<vmem>>, vector<8x4xbf16>,
    %134 = vector.extract_strided_slice %7 {offsets = [0, 28], sizes = [8, 4], strides = [1, 1]} : vector<8x32xbf16> to vector<8x4xbf16>
    %c0_62 = arith.constant 0 : index
    %c56 = arith.constant 56 : index
    %135 = vector.load %arg8[%c0_62, %c56] : memref<8x64xbf16, #tpu.memory_space<vmem>>, vector<8x4xbf16>
    %c0_63 = arith.constant 0 : index
    %c60 = arith.constant 60 : index
    %136 = vector.load %arg8[%c0_63, %c60] : memref<8x64xbf16, #tpu.memory_space<vmem>>, vector<8x4xbf16>
    %cst_64 = arith.constant dense<0.000000e+00> : vector<8x8xf32>
    %137 = tpu.matmul %134, %135, %cst_64 {dimension_numbers = #tpu.dot_dimension_numbers<[1], [1], [0], [0], [0, 0, 1, 0], [], []>} : vector<8x4xbf16>, vector<8x4xbf16>, vector<8x8xf32> -> vector<8x8xf32>
    %cst_65 = arith.constant dense<0xFF800000> : vector<8xf32>
    %138 = vector.multi_reduction <maximumf>, %137, %cst_65 [1] : vector<8x8xf32> to vector<8xf32>
    %139 = vector.shape_cast %138 : vector<8xf32> to vector<8x1xf32>
    %140 = vector.broadcast %139 : vector<8x1xf32> to vector<8x8xf32>
    %141 = arith.subf %137, %140 : vector<8x8xf32>
    %142 = math.exp %141 : vector<8x8xf32>
    %cst_66 = arith.constant dense<0.000000e+00> : vector<8xf32>
    %143 = vector.multi_reduction <add>, %142, %cst_66 [1] : vector<8x8xf32> to vector<8xf32>
    %144 = vector.shape_cast %143 : vector<8xf32> to vector<8x1xf32>
    %145 = tpu.reciprocal %144 {approx = true} : vector<8x1xf32> -> vector<8x1xf32>
    %146 = vector.broadcast %145 : vector<8x1xf32> to vector<8x8xf32>
    %147 = arith.mulf %142, %146 : vector<8x8xf32>
    %148 = arith.truncf %147 : vector<8x8xf32> to vector<8x8xbf16>
    %cst_67 = arith.constant dense<0.000000e+00> : vector<8x4xf32>
    %149 = tpu.matmul %148, %136, %cst_67 {dimension_numbers = #tpu.dot_dimension_numbers<[1], [0], [0], [1], [0, 0, 1, 1], [], []>} : vector<8x8xbf16>, vector<8x4xbf16>, vector<8x4xf32> -> vector<8x4xf32>
    %150 = arith.truncf %149 : vector<8x4xf32> to vector<8x4xbf16>
    %c0_68 = arith.constant 0 : index
    %c28_69 = arith.constant 28 : index
    %151 = vector.load %arg9[%c0_68, %c28_69] : memref<8x32xbf16, #tpu.memory_space<vmem>>, vector<8x4xbf16>
    tpu.vector_store %arg9[%c0_68, %c28_69], %150 {strides = array<i32>} : memref<8x32xbf16, #tpu.memory_space<vmem>>, vector<8x4xbf16>,
    %c0_70 = arith.constant 0 : index
    %c0_71 = arith.constant 0 : index
    %152 = vector.load %arg9[%c0_70, %c0_71] : memref<8x32xbf16, #tpu.memory_space<vmem>>, vector<8x32xbf16>
    %c0_72 = arith.constant 0 : index
    %c0_73 = arith.constant 0 : index
    %153 = vector.load %arg6[%c0_72, %c0_73] : memref<32x32xbf16, #tpu.memory_space<vmem>>, vector<32x32xbf16>
    %cst_74 = arith.constant dense<0.000000e+00> : vector<8x32xf32>
    %154 = tpu.matmul %152, %153, %cst_74 {dimension_numbers = #tpu.dot_dimension_numbers<[1], [0], [0], [1], [0, 0, 1, 1], [], []>} : vector<8x32xbf16>, vector<32x32xbf16>, vector<8x32xf32> -> vector<8x32xf32>
    %c0_75 = arith.constant 0 : index
    %c0_76 = arith.constant 0 : index
    %c0_77 = arith.constant 0 : index
    %155 = vector.load %arg7[%c0_75, %c0_76, %c0_77] : memref<1x8x32xf32, #tpu.memory_space<vmem>>, vector<1x8x32xf32>
    %156 = vector.shape_cast %155 : vector<1x8x32xf32> to vector<8x32xf32>
    %157 = vector.shape_cast %154 : vector<8x32xf32> to vector<1x8x32xf32>
    tpu.vector_store %arg7[%c0_75, %c0_76, %c0_77], %157 {strides = array<i32>} : memref<1x8x32xf32, #tpu.memory_space<vmem>>, vector<1x8x32xf32>,
    return
  }
  func.func @transform_0(%arg0: i32, %arg1: i32) -> (i32, i32, i32) {
    %c0_i32 = arith.constant 0 : i32
    %c0_i32_0 = arith.constant 0 : i32
    %c0_i32_1 = arith.constant 0 : i32
    return %arg0, %c0_i32, %c0_i32_0 : i32, i32, i32
  }
  func.func @transform_1(%arg0: i32, %arg1: i32) -> (i32, i32, i32) {
    %c0_i32 = arith.constant 0 : i32
    %c0_i32_0 = arith.constant 0 : i32
    return %arg0, %arg1, %c0_i32 : i32, i32, i32
  }
  func.func @transform_2(%arg0: i32, %arg1: i32) -> (i32, i32) {
    %c0_i32 = arith.constant 0 : i32
    %c0_i32_0 = arith.constant 0 : i32
    %c0_i32_1 = arith.constant 0 : i32
    return %c0_i32, %c0_i32_0 : i32, i32
  }
  func.func @transform_3(%arg0: i32, %arg1: i32) -> (i32, i32) {
    %c0_i32 = arith.constant 0 : i32
    %c0_i32_0 = arith.constant 0 : i32
    %c0_i32_1 = arith.constant 0 : i32
    return %c0_i32, %c0_i32_0 : i32, i32
  }
  func.func @transform_4(%arg0: i32, %arg1: i32) -> (i32, i32) {
    %c0_i32 = arith.constant 0 : i32
    %c0_i32_0 = arith.constant 0 : i32
    %c0_i32_1 = arith.constant 0 : i32
    return %c0_i32, %c0_i32_0 : i32, i32
  }
  func.func @transform_5(%arg0: i32, %arg1: i32) -> (i32, i32, i32) {
    %c0_i32 = arith.constant 0 : i32
    %c0_i32_0 = arith.constant 0 : i32
    return %arg0, %arg1, %c0_i32 : i32, i32, i32
  }
}

</mosaic_0001>

<bundles_post_ra>
// kernel: tpu_custom_call.1
= control target key start
LH: loop header
LB: loop body
LE: loop exit
PB: predicated region body
PF: predicated region fallthrough
CT: control target
= control target key end

     0   :  { %s2869_s0 = inlined_call_operand.hbm [shape: bf16[2,8,32], index: 0, kind: input, shape index: {}]   ;;  %s2870_s1 = inlined_call_operand.hbm [shape: bf16[2,8,32], index: 1, kind: input, shape index: {}]   ;;  %s2871_s2 = inlined_call_operand.hbm [shape: bf16[32,32], index: 2, kind: input, shape index: {}]   ;;  %s2872_s3 = inlined_call_operand.hbm [shape: bf16[32,64], index: 3, kind: input, shape index: {}]   ;;  %s2873_s4 = inlined_call_operand.hbm [shape: bf16[32,32], index: 4, kind: input, shape index: {}]   ;;  %s2874_s5 = inlined_call_operand.hbm [shape: f32[2,8,32], index: 5, kind: output, shape index: {}]  }
   0x1   :  { %2880 = sst [smem:[#allocation20_spill]] %s2871_s2 }
   0x2   :  { %2881 = sst [smem:[#allocation21_spill]] %s2872_s3 }
   0x3   :  { %2882 = sst [smem:[#allocation22_spill]] %s2873_s4 }
   0x4   :  { %10 = vsyncpa [#allocation5], 0 }
   0x5   :  { %12 = vsyncpa [#allocation5 + $0x1], 0 }
   0x6   :  { %13 = vsyncpa [#allocation8], 0 }
   0x7   :  { %15 = vsyncpa [#allocation8 + $0x1], 0 }
   0x8   :  { %16 = vsyncpa [#allocation11], 0 }
   0x9   :  { %17 = vsyncpa [#allocation6], 0 }
   0xa   :  { %19 = vsyncpa [#allocation6 + $0x1], 0  ;;  %s2355_s18 = smov 0   ;;  %s2357_s19 = smov 0  }
   0xb   :  { %s2359_s20 = smov 0   ;;  %s2361_s21 = smov 0  }
   0xc   :  { %s2363_s22 = smov 0   ;;  %s2365_s23 = smov 0  }
   0xd LB: > { %s2386_s24 = sadd.s32 4294967295, %s2291_s23   ;;  %s1654_s25 = sadd.s32 4294967294, %s2291_s23   ;;  %s2291_s23 = sphi %s2365_s23, %s25_s23   ;;  %s2287_s22 = sphi %s2363_s22, %s2909_s22   ;;  %s2283_s21 = sphi %s2361_s21, %s2908_s21   ;;  %s2279_s20 = sphi %s2359_s20, %s2907_s20   ;;  %s2275_s19 = sphi %s2357_s19, %s2906_s19   ;;  %s2271_s18 = sphi %s2355_s18, %s2905_s18  }
   0xe   : > { %p57_p0 = scmp.ne.s32.totalorder %s2275_s19, %s2271_s18  ;;  %p2875_p1 = scmp.eq.s32.totalorder %s2386_s24, 0 }
   0xf   : > { %p180_p3 = scmp.eq.s32.totalorder %s1654_s25, 1  ;;  %p1655_p5 = scmp.ge.s32.totalorder %s2291_s23, 1 }
  0x10   : > { %p2395_p4 = por %p2875_p1, %p57_p0  ;;  %p187_p7 = scmp.lt.s32.totalorder %s2291_s23, 3 }
  0x11   : > { %p2400_p6 = por %p180_p3, %p57_p0  ;;  %s2293_s29 = smov [#allocation9]  }
  0x12   : > { %s2883_s26 = scalar_select %p2395_p4, 1, 0 }
  0x13   : > { %s2884_s27 = scalar_select %p2400_p6, 1, 0 }
  0x14   : > { %p2405_p8 = pnand %p1655_p5, %p187_p7  ;;  %s199_s30 = sshll.u32 %s2293_s29, 4  ;;  %s2409_s30 = int_to_ptr.vmem [resolvable:$true] %s199_s30 }
  0x15   : > { %2885 = sst [smem:[#allocation19_spill]] %s2884_s27  ;;  %s2294_s7 = smov [#allocation10]  }
  0x16   : > { %s2886_s28 = scalar_select %p2405_p8, 1, 0 }
  0x17   : > { %p1901_p9 = pneg %p2405_p8  ;;  %s212_s8 = sshll.u32 %s2294_s7, 4  ;;  %s2420_s8 = int_to_ptr.vmem [resolvable:$true] %s212_s8 }
  0x18   : > { %s2295_s9 = smov [#allocation12]   ;;  %s2888_s2 = sld [smem:[#allocation20_spill]] }
  0x19   : > { %p2416_p11 = pnand %p1901_p9, %p2875_p1  ;;  %s2422_s10 = sshll.u32 %s2295_s9, 4  ;;  %s226_s10 = int_to_ptr.vmem [resolvable:$true] %s2422_s10 }
  0x1b   : > { %p2432_p13 = pneg %p2416_p11 }
  0x1e   : > { %s2053_s13 = scalar_lea.hbm %s2888_s2, 256 }
  0x1f   : > { %p2054_p12 = scmp.ne.s32.totalorder %s2888_s2, %s2053_s13  ;;  %p2060_p5 = scmp.lt.u32.totalorder %s2053_s13, %s2888_s2 }
  0x21   : > { %p2056_p0 = pnand %p2432_p13, %p2054_p12 }
  0x23   : > { %p2057_p3 = pneg %p2056_p0 }
  0x25   : > { %p2062_p7 = pnand %p2060_p5, %p2057_p3 }
  0x27   : > { %2065 = shalt.err (!%p2062_p7)
}
  0x28   : > { %s2066_s29 = scalar_lea.vmem %s2409_s30, 256  ;;  %p2074_p2 = scmp.lt.s32.totalorder %s2409_s30, %s2409_s30 }
  0x29   : > { %p2067_p9 = scmp.ne.s32.totalorder %s2409_s30, %s2066_s29  ;;  %p2075_p6 = scmp.lt.s32.totalorder %s2066_s29, %s2066_s29 }
  0x2b   : > { %p2069_p10 = pnand %p2067_p9, %p2432_p13  ;;  %p2076_p12 = por %p2075_p6, %p2074_p2 }
  0x2d   : > { %p2070_p1 = pneg %p2069_p10 }
  0x2f   : > { %p2077_p0 = pnand %p2076_p12, %p2070_p1 }
  0x31   : > { %2080 = shalt.err (!%p2077_p0)
}
  0x32   : > { %s2296_s7 = smov 64   ;;  %s2297_s9 = smov 4  }
  0x33   : > { %1904 = dma.hbm_to_vmem [thread:$0]  (!%p2416_p11), %s2888_s2, 256, %s2409_s30, [#allocation8], %s2296_s7, %s2296_s7, %s2297_s9  }
  0x34   : > { %s2890_s3 = sld [smem:[#allocation21_spill]] }
  0x3a   : > { %s2081_s15 = scalar_lea.hbm %s2890_s3, 256 }
  0x3b   : > { %p2082_p1 = scmp.ne.s32.totalorder %s2890_s3, %s2081_s15  ;;  %p2088_p10 = scmp.lt.u32.totalorder %s2081_s15, %s2890_s3 }
  0x3d   : > { %p2084_p2 = pnand %p2082_p1, %p2432_p13 }
  0x3f   : > { %p2085_p6 = pneg %p2084_p2 }
  0x41   : > { %p2090_p3 = pnand %p2088_p10, %p2085_p6 }
  0x43   : > { %2093 = shalt.err (!%p2090_p3)
}
  0x44   : > { %s2094_s30 = scalar_lea.vmem %s2420_s8, 256  ;;  %p2102_p12 = scmp.lt.s32.totalorder %s2420_s8, %s2420_s8 }
  0x45   : > { %p2095_p5 = scmp.ne.s32.totalorder %s2420_s8, %s2094_s30  ;;  %p2103_p0 = scmp.lt.s32.totalorder %s2094_s30, %s2094_s30 }
  0x47   : > { %p2097_p7 = pnand %p2095_p5, %p2432_p13  ;;  %p2104_p1 = por %p2103_p0, %p2102_p12 }
  0x49   : > { %p2098_p9 = pneg %p2097_p7 }
  0x4b   : > { %p2105_p2 = pnand %p2104_p1, %p2098_p9 }
  0x4d   : > { %2108 = shalt.err (!%p2105_p2)
}
  0x4e   : > { %1907 = dma.hbm_to_vmem [thread:$0]  (!%p2416_p11), %s2890_s3, 256, %s2420_s8, [#allocation11], %s2296_s7, %s2296_s7, %s2297_s9  }
  0x4f   : > { %s2891_s4 = sld [smem:[#allocation22_spill]] }
  0x55   : > { %s2109_s14 = scalar_lea.hbm %s2891_s4, 256 }
  0x56   : > { %p2110_p6 = scmp.ne.s32.totalorder %s2891_s4, %s2109_s14  ;;  %p2116_p5 = scmp.lt.u32.totalorder %s2109_s14, %s2891_s4 }
  0x58   : > { %p2112_p10 = pnand %p2110_p6, %p2432_p13 }
  0x5a   : > { %p2113_p3 = pneg %p2112_p10 }
  0x5c   : > { %p2118_p7 = pnand %p2116_p5, %p2113_p3 }
  0x5e   : > { %2121 = shalt.err (!%p2118_p7)
}
  0x5f   : > { %s2122_s30 = scalar_lea.vmem %s226_s10, 256  ;;  %p2130_p1 = scmp.lt.s32.totalorder %s226_s10, %s226_s10 }
  0x60   : > { %p2123_p9 = scmp.ne.s32.totalorder %s226_s10, %s2122_s30  ;;  %p2131_p2 = scmp.lt.s32.totalorder %s2122_s30, %s2122_s30 }
  0x62   : > { %p2125_p12 = pnand %p2123_p9, %p2432_p13  ;;  %p2132_p4 = por %p2131_p2, %p2130_p1 }
  0x64   : > { %p2126_p0 = pneg %p2125_p12 }
  0x66   : > { %p2133_p8 = pnand %p2132_p4, %p2126_p0 }
  0x68   : > { %2136 = shalt.err (!%p2133_p8)
}
  0x69   : > { %1910 = dma.hbm_to_vmem [thread:$0]  (!%p2416_p11), %s2891_s4, 256, %s226_s10, [#allocation11], %s2296_s7, %s2296_s7, %s2297_s9  }
  0x6a   : > { %s44_s16 = sadd.s32 1, %s2279_s20  ;;  %s37_s6 = sadd.s32 1, %s2287_s22 }
  0x6b   : > { %p51_p4 = scmp.ne.s32.totalorder %s2279_s20, %s2275_s19  ;;  %p39_p8 = scmp.ge.s32.totalorder %s37_s6, 2 }
  0x6c   : > { %p52_p13 = scmp.eq.s32.totalorder %s2291_s23, 0  ;;  %p2892_p6 = scmp.eq.s32.totalorder %s2386_s24, 1 }
  0x6d   : > { %p1925_p3 = scmp.lt.s32.totalorder %s2291_s23, 2  ;;  %s2911_s6 = smov (%p39_p8, %s37_s6), 0 }
  0x6e   : > { %p2511_p10 = por %p2892_p6, %p51_p4  ;;  %p53_p5 = por %p52_p13, %p51_p4 }
  0x6f   : > { %s239_s12 = sand.u32 1, %s2279_s20   ;;  %s41_s13 = ssub.s32 %s2287_s22, %s2911_s6 }
  0x70   : > { %s2893_s11 = scalar_select %p2511_p10, 1, 0 }
  0x71   : > { %p42_p11 = scmp.eq.s32.totalorder %s41_s13, 0  ;;  %s2521_s10 = sshll.u32 %s239_s12, 2 }
  0x72   : > { %s1661_s7 = sshll.u32 %s2287_s22, 6  ;;  %s243_s25 = scalar_lea.vmem [#allocation4], %s2521_s10 }
  0x73   : > { %s2525_s9 = scalar_select %p42_p11, %s2279_s20, %s44_s16  }
  0x74   : > { %s2530_s17 = scalar_lea.hbm %s2869_s0, %s1661_s7  ;;  %s250_s29 = sshll.u32 %s243_s25, 4  ;;  %s2533_s29 = int_to_ptr.vmem [resolvable:$true] %s250_s29 }
  0x75   : > { %p2537_p7 = pnand %p1925_p3, %p53_p5  ;;  %s2544_s16 = scalar_lea.hbm %s2870_s1, %s1661_s7 }
  0x76   : > { %s257_s13 = sand.u32 1, %s2291_s23   ;;  %s240_s14 = scalar_lea.sflag [#allocation5], %s239_s12 }
  0x77   : > { %s2137_s15 = scalar_lea.hbm %s2530_s17, 64  ;;  %p2139_p12 = pneg %p2537_p7 }
  0x78   : > { %p2138_p9 = scmp.ne.s32.totalorder %s2530_s17, %s2137_s15  ;;  %s2142_s3 = scalar_lea.hbm %s2869_s0, 128 }
  0x79   : > { %p2143_p2 = scmp.lt.u32.totalorder %s2530_s17, %s2869_s0  ;;  %p2144_p4 = scmp.lt.u32.totalorder %s2142_s3, %s2137_s15 }
  0x7a   : > { %p2140_p0 = pnand %p2139_p12, %p2138_p9  ;;  %p2146_p13 = scmp.lt.u32.totalorder %s2137_s15, %s2530_s17 }
  0x7b   : > { %p2145_p8 = por %p2144_p4, %p2143_p2 }
  0x7c   : > { %p2141_p1 = pneg %p2140_p0 }
  0x7d   : > { %p2147_p6 = por %p2146_p13, %p2145_p8 }
  0x7f   : > { %p2148_p3 = pnand %p2147_p6, %p2141_p1 }
  0x81   : > { %2151 = shalt.err (!%p2148_p3)
}
  0x82   : > { %s2152_s12 = scalar_lea.vmem %s2533_s29, 64  ;;  %s2298_s2 = smov [#allocation4]  }
  0x83   : > { %p2153_p5 = scmp.ne.s32.totalorder %s2533_s29, %s2152_s12  ;;  %s2157_s7 = sshll.u32 %s2298_s2, 4  ;;  %s2158_s7 = int_to_ptr.vmem [resolvable:$false] %s2157_s7 }
  0x84   : > { %s2159_s4 = scalar_lea.vmem %s2158_s7, 128  ;;  %p2160_p0 = scmp.lt.s32.totalorder %s2533_s29, %s2158_s7 }
  0x85   : > { %p2155_p11 = pnand %p2153_p5, %p2139_p12  ;;  %p2161_p2 = scmp.lt.s32.totalorder %s2159_s4, %s2152_s12 }
  0x87   : > { %p2156_p9 = pneg %p2155_p11  ;;  %p2162_p4 = por %p2161_p2, %p2160_p0 }
  0x89   : > { %p2163_p8 = pnand %p2162_p4, %p2156_p9 }
  0x8b   : > { %2166 = shalt.err (!%p2163_p8)
}
  0x8c   : > { %1914 = dma.hbm_to_vmem [thread:$0]  (!%p2537_p7), %s2530_s17, 64, %s2533_s29, %s240_s14  }
  0x8d   : > { %s261_s3 = scalar_lea.vmem [#allocation7], %s2521_s10  ;;  %s258_s15 = scalar_lea.sflag [#allocation8], %s257_s13 }
  0x8e   : > { %s269_s27 = sshll.u32 %s261_s3, 4  ;;  %s2167_s25 = scalar_lea.hbm %s2544_s16, 64  ;;  %s270_s27 = int_to_ptr.vmem [resolvable:$true] %s269_s27 }
  0x8f   : > { %p2168_p1 = scmp.ne.s32.totalorder %s2544_s16, %s2167_s25  ;;  %s2172_s2 = scalar_lea.hbm %s2870_s1, 128 }
  0x90   : > { %p2173_p3 = scmp.lt.u32.totalorder %s2544_s16, %s2870_s1  ;;  %p2174_p5 = scmp.lt.u32.totalorder %s2172_s2, %s2167_s25 }
  0x91   : > { %p2170_p13 = pnand %p2168_p1, %p2139_p12  ;;  %p2176_p9 = scmp.lt.u32.totalorder %s2167_s25, %s2544_s16 }
  0x92   : > { %p2175_p11 = por %p2174_p5, %p2173_p3 }
  0x93   : > { %p2171_p6 = pneg %p2170_p13 }
  0x94   : > { %p2177_p0 = por %p2176_p9, %p2175_p11 }
  0x96   : > { %p2178_p2 = pnand %p2177_p0, %p2171_p6 }
  0x98   : > { %2181 = shalt.err (!%p2178_p2)
}
  0x99   : > { %s2182_s10 = scalar_lea.vmem %s270_s27, 64  ;;  %s2299_s17 = smov [#allocation7]  }
  0x9a   : > { %p2183_p4 = scmp.ne.s32.totalorder %s270_s27, %s2182_s10  ;;  %s2187_s29 = sshll.u32 %s2299_s17, 4  ;;  %s2188_s29 = int_to_ptr.vmem [resolvable:$false] %s2187_s29 }
  0x9b   : > { %s2189_s13 = scalar_lea.vmem %s2188_s29, 128  ;;  %p2190_p13 = scmp.lt.s32.totalorder %s270_s27, %s2188_s29 }
  0x9c   : > { %p2185_p8 = pnand %p2183_p4, %p2139_p12  ;;  %p2191_p10 = scmp.lt.s32.totalorder %s2189_s13, %s2182_s10 }
  0x9e   : > { %p2186_p1 = pneg %p2185_p8  ;;  %p2192_p3 = por %p2191_p10, %p2190_p13 }
  0xa0   : > { %p2193_p5 = pnand %p2192_p3, %p2186_p1 }
  0xa2   : > { %2196 = shalt.err (!%p2193_p5)
}
  0xa3   : > { %1917 = dma.hbm_to_vmem [thread:$0]  (!%p2537_p7), %s2544_s16, 64, %s270_s27, %s258_s15  }
  0xa4   : > { %p2895_p6 = scmp.ne.s32.totalorder %s2886_s28, 0 }
  0xa5   : > { %s2597_s14 = sand.u32 (!%p2895_p6), 1, %s2275_s19   ;;  %p2896_p12 = scmp.ne.s32.totalorder (!%p2895_p6), %s2883_s26, 0 }
  0xa6   : > { %278 = sbr.rel (%p2895_p6) target bundleno = 1735 (0x6c7), region = 40  ;;  %s1665_s3 = sshll.u32 (!%p2895_p6), %s2597_s14, 2 }
  0xa7   : > { %s281_s25 = scalar_lea.sflag (!%p2895_p6), [#allocation5], %s2597_s14  ;;  %s284_s8 = scalar_lea.vmem (!%p2895_p6), [#allocation4], %s1665_s3 }
  0xad   : > { %2250 = dma.done.wait (%p2896_p12), %s281_s25, 64  }
  0xae   : > { %2252 = vsyncadd (%p2896_p12), %s281_s25, 4294967232  ;;  %s289_s30 = sand.u32 1, %s2386_s24   ;;  %s293_s28 = scalar_lea.vmem [#allocation7], %s1665_s3 }
  0xaf   : > { %s290_s16 = scalar_lea.sflag [#allocation8], %s289_s30 }
  0xb0   : > { %2254 = dma.done.wait (%p2896_p12), %s290_s16, 64  }
  0xb1   : > { %2256 = vsyncadd (%p2896_p12), %s290_s16, 4294967232  ;;  %p2897_p10 = scmp.eq.s32.totalorder %s2386_s24, 0 }
  0xb3   : > { %2258 = dma.done.wait (%p2897_p10), [#allocation8], 256   ;;  %p2898_p7 = pmov %p2897_p10 }
  0xb5   : > { %2260 = vsyncadd (%p2898_p7), [#allocation8], 4294967040  ;;  %p2899_p11 = pmov %p2898_p7 }
  0xb6   : > { %p2900_p9 = pmov %p2898_p7 }
  0xb7   : > { %2262 = dma.done.wait (%p2899_p11), [#allocation11], 512  }
  0xb8   : > { %2264 = vsyncadd (%p2900_p9), [#allocation11], 4294966784  ;;  %v2300_v0 = vmov 0.0   ;;  %vm2301_vm0 = vmmov 0   ;;  %v2007_v1 = vld [vmem:[#allocation10] sm:$0xff]   ;;  %v2008_v2 = vld [vmem:[#allocation10 + $0x8] sm:$0xff]  }
  0xb9   : > { %1763 = vmatprep.subr.bf16.mxu0 %v2300_v0  ;;  %1767 = vmatprep.mubr.msk.bf16.mxu0 %vm2301_vm0, %v2300_v0  ;;  %v2009_v3 = vld [vmem:[#allocation9] sm:$0xff]   ;;  %v2010_v4 = vld [vmem:[#allocation9 + $0x8] sm:$0xff]   ;;  %v342_v5 = vld [vmem:[%s284_s8] sm:$0xf]  ;;  %vm359_vm1 = vcmask 261120   ;;  %vm404_vm2 = vcmask 519168  }
  0xba   : > { %1771 = vmatprep.subr.bf16.mxu1 %v2300_v0  ;;  %1775 = vmatprep.mubr.msk.bf16.mxu1 %vm2301_vm0, %v2300_v0  ;;  %v406_v6 = vld [vmem:[%s293_s28] sm:$0xf]  ;;  %vm469_vm3 = vcmask 31744   ;;  %s2302_s24 = smov 112   ;;  %s2303_s26 = smov 120   ;;  %vm516_vm4 = vcmask 64512  }
  0xbb   : > { %1764 = vmatpush3.bf16.msra.mxu0 %v2007_v1  ;;  %1772 = vmatpush3.bf16.msra.mxu1 %v2009_v3  ;;  %s2304_s27 = smov 124   ;;  %s2305_s15 = smov 116   ;;  %vm537_vm5 = vcmask 1043456   ;;  %vm582_vm6 = vcmask 27648   ;;  %vm706_vm7 = vcmask 60448   ;;  %vm829_vm8 = vcmask 93248  }
  0xbc   : > { %1765 = vmatprep.subr.bf16.mxu0 %v2300_v0  ;;  %1773 = vmatprep.subr.bf16.mxu1 %v2300_v0  ;;  %s2306_s12 = smov 104   ;;  %s2307_s2 = smov 96   ;;  %vm952_vm9 = vcmask 126048   ;;  %vm1075_vm10 = vcmask 158848   ;;  %vm1198_vm11 = vcmask 191648   ;;  %vm1321_vm12 = vcmask 224448  }
  0xbd   : > { %s2308_s7 = smov 108   ;;  %s2309_s4 = smov 88   ;;  %vm1444_vm13 = vcmask 257248  }
  0xbe   : > { %s2310_s10 = smov 80   ;;  %s2311_s17 = smov 100  }
  0xbf   : > { %1766 = vmatpush3.bf16.msra.mxu0 %v2008_v2  ;;  %1774 = vmatpush3.bf16.msra.mxu1 %v2010_v4  ;;  %s2312_s29 = smov 72   ;;  %s2313_s13 = smov 84  }
  0xc0   : > { %1779 = vmatprep.subr.bf16.mxu0 %v2300_v0  ;;  %1785 = vmatprep.subr.bf16.mxu1 %v2300_v0  ;;  %s2314_s3 = smov 76   ;;  %s2315_s25 = smov 68  }
  0xc1   : > { %s2316_s8 = smov 92   ;;  %s2317_s30 = smov 4  }
  0xc2   : > { %1768 = vmatmul.mubr.msk.bf16.vlgmr.msra.gmra.mrb[0].mxu0 %vm359_vm1, %v342_v5  ;;  %1776 = vmatmul.mubr.msk.bf16.vlgmr.msra.gmra.mrb[0].mxu1 %vm359_vm1, %v406_v6  ;;  %s2318_s16 = smov 8   ;;  %s2319_s28 = smov 12  }
  0xc3   : > { %1781 = vmatprep.mubr.msk.bf16.mxu0 %vm2301_vm0, %v2300_v0  ;;  %1787 = vmatprep.mubr.msk.bf16.mxu1 %vm2301_vm0, %v2300_v0  ;;  %p2901_p2 = scmp.ne.s32.totalorder %s2893_s11, 0 }
 0x195   : > { %v397_v7 = vpop.f32.mrb[0].mxu0  ;;  %v461_v12 = vpop.f32.mrb[0].mxu1 }
 0x196   : > { %v403_v8 = vpack.c.bf16 %v397_v7, %v397_v7  ;;  %v1769_v9 = vpop.f32.mrb[1].mxu0  ;;  %v1777_v13 = vpop.f32.mrb[1].mxu1  ;;  %v467_v20 = vpack.c.bf16 %v461_v12, %v461_v12 }
 0x197   : > { %v400_v10 = vpop.f32.mrb[2].mxu0  ;;  %v464_v14 = vpop.f32.mrb[2].mxu1 }
 0x198   : > { %405 = vst.msk [vmem:[#allocation2] sm:$0xf] %vm404_vm2, %v403_v8  ;;  %v1770_v11 = vpop.f32.mrb[3].mxu0  ;;  %v1778_v15 = vpop.f32.mrb[3].mxu1 }
 0x19f   : > { %v2634_v16 = vld [vmem:[#allocation2] sm:$0xf] }
 0x1a0   : > { %v2636_v17 = vld [vmem:[#allocation2] ss:$0 sps:$4 sm:$0xff]   ;;  %v474_v18 = vsel %vm469_vm3, %v2634_v16, 0 }
 0x1a1   : > { %v2640_v19 = vld [vmem:[#allocation2] ss:$0 sps:$4 sm:$0xff]   ;;  %1780 = vmatpush3.bf16.xpose.msra.mxu0 %v474_v18  ;;  %714 = vrot.lane.b32.xlu1 %v2636_v17, %s2302_s24 }
 0x1a2   : > { %591 = vrot.lane.b32.xlu0 %v2640_v19, %s2303_s26  ;;  %1791 = vmatprep.subr.bf16.mxu0 %v2300_v0  ;;  %v2647_v21 = vld [vmem:[#allocation2] ss:$0 sps:$4 sm:$0xff]  }
 0x1a3   : > { %v2653_v22 = vld [vmem:[#allocation2] ss:$0 sps:$4 sm:$0xff]  }
 0x1a4   : > { %v2656_v23 = vld [vmem:[#allocation2] ss:$0 sps:$4 sm:$0xff]  }
 0x1a5   : > { %709 = vrot.lane.b32.xlu1 %v467_v20, %s2303_s26  ;;  %v2660_v24 = vld [vmem:[#allocation2] ss:$0 sps:$4 sm:$0xff]   ;;  %s2321_s26 = smov 20  }
 0x1a6   : > { %586 = vrot.lane.b32.xlu0 %v467_v20, %s2304_s27  ;;  %v2663_v25 = vld [vmem:[#allocation2] ss:$0 sps:$4 sm:$0xff]  }
 0x1a8   : > { %1782 = vmatmul.mubr.msk.bf16.vlgmr.msra.gmra.mrb[4].mxu0 %vm469_vm3, %v467_v20 }
 0x1a9   : > { %832 = vrot.lane.b32.xlu1 %v467_v20, %s2305_s15  ;;  %1793 = vmatprep.mubr.msk.bf16.mxu0 %vm2301_vm0, %v2300_v0 }
 0x1aa   : > { %837 = vrot.lane.b32.xlu0 %v2647_v21, %s2306_s12 }
 0x1ad   : > { %955 = vrot.lane.b32.xlu1 %v467_v20, %s2302_s24  ;;  %s2320_s24 = smov 16  }
 0x1ae   : > { %960 = vrot.lane.b32.xlu0 %v2653_v22, %s2307_s2  ;;  %s1712_s2 = sshll.u32 %s2283_s21, 7  ;;  %s2324_s21 = smov [#allocation13]  }
 0x1b1   : > { %1078 = vrot.lane.b32.xlu1 %v467_v20, %s2308_s7 }
 0x1b2   : > { %1083 = vrot.lane.b32.xlu0 %v2656_v23, %s2309_s4 }
 0x1b5   : > { %1201 = vrot.lane.b32.xlu1 %v467_v20, %s2306_s12  ;;  %s1670_s12 = sshll.u32 %s2597_s14, 3 }
 0x1b6   : > { %1206 = vrot.lane.b32.xlu0 %v2660_v24, %s2310_s10 }
 0x1b9   : > { %1324 = vrot.lane.b32.xlu1 %v467_v20, %s2311_s17 }
 0x1ba   : > { %1329 = vrot.lane.b32.xlu0 %v2663_v25, %s2312_s29  ;;  %s2819_s29 = scalar_lea.hbm %s2874_s5, %s1712_s2 }
 0x213   : > { %v715_v28 = vpop.permute.xlu1 %714 }
 0x214   : > { %v592_v26 = vpop.permute.xlu0 %591  ;;  %v720_v30 = vsel %vm469_vm3, %v715_v28, 0 }
 0x215   : > { %v597_v27 = vsel %vm469_vm3, %v592_v26, 0 }
 0x216   : > { %1792 = vmatpush3.bf16.xpose.msra.mxu0 %v597_v27 }
 0x217   : > { %1803 = vmatprep.subr.bf16.mxu0 %v2300_v0  ;;  %v710_v32 = vpop.permute.xlu1 %709 }
 0x218   : > { %v587_v29 = vpop.permute.xlu0 %586 }
 0x21b   : > { %v833_v35 = vpop.permute.xlu1 %832 }
 0x21c   : > { %v838_v31 = vpop.permute.xlu0 %837 }
 0x21d   : > { %1794 = vmatmul.mubr.msk.bf16.vlgmr.msra.gmra.mrb[8].mxu0 %vm469_vm3, %v587_v29  ;;  %v843_v33 = vsel %vm469_vm3, %v838_v31, 0  ;;  %v1678_v31 = vcombine.low %v2634_v16, %v2634_v16 }
 0x21e   : > { %1804 = vmatpush3.bf16.xpose.msra.mxu0 %v720_v30  ;;  %1805 = vmatprep.mubr.msk.bf16.mxu0 %vm2301_vm0, %v2300_v0 }
 0x21f   : > { %1815 = vmatprep.subr.bf16.mxu0 %v2300_v0  ;;  %v956_v38 = vpop.permute.xlu1 %955 }
 0x220   : > { %v961_v34 = vpop.permute.xlu0 %960 }
 0x221   : > { %v966_v36 = vsel %vm469_vm3, %v961_v34, 0 }
 0x223   : > { %v1079_v41 = vpop.permute.xlu1 %1078 }
 0x224   : > { %v1084_v37 = vpop.permute.xlu0 %1083 }
 0x225   : > { %1806 = vmatmul.mubr.msk.bf16.vlgmr.msra.gmra.mrb[12].mxu0 %vm469_vm3, %v710_v32  ;;  %v1089_v39 = vsel %vm469_vm3, %v1084_v37, 0 }
 0x226   : > { %1816 = vmatpush3.bf16.xpose.msra.mxu0 %v843_v33  ;;  %1817 = vmatprep.mubr.msk.bf16.mxu0 %vm2301_vm0, %v2300_v0 }
 0x227   : > { %1827 = vmatprep.subr.bf16.mxu0 %v2300_v0  ;;  %v1202_v44 = vpop.permute.xlu1 %1201 }
 0x228   : > { %v1207_v40 = vpop.permute.xlu0 %1206 }
 0x229   : > { %v1212_v42 = vsel %vm469_vm3, %v1207_v40, 0 }
 0x22b   : > { %v1325_v46 = vpop.permute.xlu1 %1324 }
 0x22c   : > { %v1330_v43 = vpop.permute.xlu0 %1329 }
 0x22d   : > { %1818 = vmatmul.mubr.msk.bf16.vlgmr.msra.gmra.mrb[16].mxu0 %vm469_vm3, %v833_v35  ;;  %v1335_v45 = vsel %vm469_vm3, %v1330_v43, 0 }
 0x22e   : > { %1828 = vmatpush3.bf16.xpose.msra.mxu0 %v966_v36  ;;  %1829 = vmatprep.mubr.msk.bf16.mxu0 %vm2301_vm0, %v2300_v0 }
 0x22f   : > { %1839 = vmatprep.subr.bf16.mxu0 %v2300_v0 }
 0x235   : > { %1830 = vmatmul.mubr.msk.bf16.vlgmr.msra.gmra.mrb[20].mxu0 %vm469_vm3, %v956_v38 }
 0x236   : > { %1840 = vmatpush3.bf16.xpose.msra.mxu0 %v1089_v39  ;;  %1841 = vmatprep.mubr.msk.bf16.mxu0 %vm2301_vm0, %v2300_v0 }
 0x237   : > { %1851 = vmatprep.subr.bf16.mxu0 %v2300_v0 }
 0x23d   : > { %1842 = vmatmul.mubr.msk.bf16.vlgmr.msra.gmra.mrb[24].mxu0 %vm469_vm3, %v1079_v41 }
 0x23e   : > { %1852 = vmatpush3.bf16.xpose.msra.mxu0 %v1212_v42  ;;  %1853 = vmatprep.mubr.msk.bf16.mxu0 %vm2301_vm0, %v2300_v0 }
 0x23f   : > { %1863 = vmatprep.subr.bf16.mxu0 %v2300_v0 }
 0x245   : > { %1854 = vmatmul.mubr.msk.bf16.vlgmr.msra.gmra.mrb[28].mxu0 %vm469_vm3, %v1202_v44 }
 0x246   : > { %1864 = vmatpush3.bf16.xpose.msra.mxu0 %v1335_v45  ;;  %1865 = vmatprep.mubr.msk.bf16.mxu0 %vm2301_vm0, %v2300_v0 }
 0x247   : > { %1875 = vmatprep.subr.bf16.mxu0 %v2300_v0 }
 0x24d   : > { %1866 = vmatmul.mubr.msk.bf16.vlgmr.msra.gmra.mrb[32].mxu0 %vm469_vm3, %v1325_v46 }
 0x24e   : > { %1879 = vmatprep.mubr.msk.bf16.mxu0 %vm2301_vm0, %v2300_v0 }
 0x27b   : > { %v510_v47 = vpop.f32.mrb[4].mxu0 }
 0x27c   : > { %v1783_v48 = vpop.f32.mrb[5].mxu0  ;;  %v517_v49 = vsel %vm516_vm4, %v510_v47, -inf }
 0x27d   : > { %518 = vmax.xlane.f32.xlu0 %v517_v49  ;;  %v513_v50 = vpop.f32.mrb[6].mxu0 }
 0x27e   : > { %v1784_v51 = vpop.f32.mrb[7].mxu0 }
 0x2f0   : > { %v633_v52 = vpop.f32.mrb[8].mxu0 }
 0x2f1   : > { %v1795_v53 = vpop.f32.mrb[9].mxu0  ;;  %v639_v54 = vsel %vm516_vm4, %v633_v52, -inf }
 0x2f2   : > { %640 = vmax.xlane.f32.xlu1 %v639_v54  ;;  %v636_v55 = vpop.f32.mrb[10].mxu0 }
 0x2f3   : > { %v1796_v56 = vpop.f32.mrb[11].mxu0 }
 0x2f8   : > { %v756_v57 = vpop.f32.mrb[12].mxu0 }
 0x2f9   : > { %v1807_v58 = vpop.f32.mrb[13].mxu0  ;;  %v762_v59 = vsel %vm516_vm4, %v756_v57, -inf }
 0x2fa   : > { %763 = vmax.xlane.f32.xlu0 %v762_v59  ;;  %v759_v60 = vpop.f32.mrb[14].mxu0 }
 0x2fb   : > { %v1808_v61 = vpop.f32.mrb[15].mxu0 }
 0x300   : > { %v2705_v62 = vpop.f32.mrb[16].mxu0 }
 0x301   : > { %v1819_v63 = vpop.f32.mrb[17].mxu0  ;;  %v885_v1 = vsel %vm516_vm4, %v2705_v62, -inf }
 0x302   : > { %886 = vmax.xlane.f32.xlu0 %v885_v1  ;;  %v882_v2 = vpop.f32.mrb[18].mxu0 }
 0x303   : > { %v1820_v3 = vpop.f32.mrb[19].mxu0 }
 0x308   : > { %v2709_v4 = vpop.f32.mrb[20].mxu0 }
 0x309   : > { %v1831_v5 = vpop.f32.mrb[21].mxu0  ;;  %v1008_v6 = vsel %vm516_vm4, %v2709_v4, -inf }
 0x30a   : > { %1009 = vmax.xlane.f32.xlu1 %v1008_v6  ;;  %v1005_v7 = vpop.f32.mrb[22].mxu0  ;;  %v519_v32 = vpop.xlane.xlu0 %518 }
 0x30b   : > { %v1832_v8 = vpop.f32.mrb[23].mxu0  ;;  %v520_v33 = vsub.f32 %v510_v47, %v519_v32 }
 0x30d   : > { %v521_v34 = vmul.f32 1.442695, %v520_v33 }
 0x30f   : > { %2021 = vpow2.f32 %v521_v34 }
 0x310   : > { %v1125_v9 = vpop.f32.mrb[24].mxu0 }
 0x311   : > { %v1843_v10 = vpop.f32.mrb[25].mxu0  ;;  %v1131_v11 = vsel %vm516_vm4, %v1125_v9, -inf }
 0x312   : > { %1132 = vmax.xlane.f32.xlu0 %v1131_v11  ;;  %v1128_v12 = vpop.f32.mrb[26].mxu0 }
 0x313   : > { %v1844_v13 = vpop.f32.mrb[27].mxu0 }
 0x318   : > { %v1248_v14 = vpop.f32.mrb[28].mxu0 }
 0x319   : > { %v1855_v15 = vpop.f32.mrb[29].mxu0  ;;  %v1254_v18 = vsel %vm516_vm4, %v1248_v14, -inf  ;;  %v2724_v36 = vpop.eup %2021 }
 0x31a   : > { %1255 = vmax.xlane.f32.xlu1 %v1254_v18  ;;  %v1251_v20 = vpop.f32.mrb[30].mxu0  ;;  %v523_v37 = vsel %vm516_vm4, %v2724_v36, 0.0 }
 0x31b   : > { %v1856_v26 = vpop.f32.mrb[31].mxu0 }
 0x320   : > { %v2715_v27 = vpop.f32.mrb[32].mxu0 }
 0x321   : > { %v1867_v28 = vpop.f32.mrb[33].mxu0  ;;  %v1377_v35 = vsel %vm516_vm4, %v2715_v27, -inf }
 0x322   : > { %v1374_v29 = vpop.f32.mrb[34].mxu0 }
 0x323   : > { %v1868_v30 = vpop.f32.mrb[35].mxu0 }
 0x328   : > { %651 = vrot.lane.b32.xlu0 %v2640_v19, %s2305_s15  ;;  %s2323_s15 = smov 28  }
 0x32b   : > { %532 = vrot.lane.b32.xlu1 %v1678_v31, %s2304_s27  ;;  %s2322_s27 = smov 24  }
 0x347   : > { %1378 = vmax.xlane.f32.xlu0 %v1377_v35 }
 0x34f   : > { %524 = vadd.xlane.f32.xlu1 %v523_v37 }
 0x37f   : > { %v641_v19 = vpop.xlane.xlu1 %640 }
 0x380   : > { %v642_v38 = vsub.f32 %v633_v52, %v641_v19 }
 0x382   : > { %v643_v39 = vmul.f32 1.442695, %v642_v38 }
 0x384   : > { %2023 = vpow2.f32 %v643_v39 }
 0x387   : > { %v764_v16 = vpop.xlane.xlu0 %763 }
 0x388   : > { %v765_v40 = vsub.f32 %v756_v57, %v764_v16 }
 0x38a   : > { %v766_v41 = vmul.f32 1.442695, %v765_v40 }
 0x38c   : > { %2025 = vpow2.f32 %v766_v41 }
 0x38e   : > { %v2728_v42 = vpop.eup %2023 }
 0x38f   : > { %v645_v43 = vsel %vm516_vm4, %v2728_v42, 0.0  ;;  %v887_v49 = vpop.xlane.xlu0 %886 }
 0x390   : > { %646 = vadd.xlane.f32.xlu0 %v645_v43  ;;  %v888_v51 = vsub.f32 %v2705_v62, %v887_v49 }
 0x392   : > { %v889_v52 = vmul.f32 1.442695, %v888_v51 }
 0x394   : > { %2027 = vpow2.f32 %v889_v52 }
 0x396   : > { %v2732_v44 = vpop.eup %2025 }
 0x397   : > { %v768_v45 = vsel %vm516_vm4, %v2732_v44, 0.0  ;;  %v1010_v46 = vpop.xlane.xlu1 %1009 }
 0x398   : > { %769 = vadd.xlane.f32.xlu1 %v768_v45  ;;  %v1011_v53 = vsub.f32 %v2709_v4, %v1010_v46 }
 0x39e   : > { %v2744_v58 = vpop.eup %2027 }
 0x39f   : > { %v1133_v54 = vpop.xlane.xlu0 %1132  ;;  %v891_v59 = vsel %vm516_vm4, %v2744_v58, 0.0 }
 0x3a0   : > { %v1134_v55 = vsub.f32 %v1125_v9, %v1133_v54 }
 0x3a2   : > { %v1135_v57 = vmul.f32 1.442695, %v1134_v55 }
 0x3a3   : > { %v652_v3 = vpop.permute.xlu0 %651 }
 0x3a4   : > { %v657_v13 = vsel %vm537_vm5, %v652_v3, 0 }
 0x3a6   : > { %774 = vrot.lane.b32.xlu0 %v2636_v17, %s2308_s7  ;;  %v1012_v17 = vmul.f32 1.442695, %v1011_v53  ;;  %s336_s7 = scalar_lea.vmem [#allocation13], %s1670_s12 }
 0x3a7   : > { %v1256_v47 = vpop.xlane.xlu1 %1255  ;;  %s1522_s4 = sshll.u32 %s336_s7, 4  ;;  %s2821_s4 = int_to_ptr.vmem [resolvable:$true] %s1522_s4 }
 0x3a8   : > { %v1257_v56 = vsub.f32 %v1248_v14, %v1256_v47  ;;  %2029 = vpow2.f32 %v1012_v17 }
 0x3a9   : > { %897 = vrot.lane.b32.xlu1 %v2647_v21, %s2311_s17  ;;  %2031 = vpow2.f32 %v1135_v57 }
 0x3aa   : > { %v1258_v21 = vmul.f32 1.442695, %v1257_v56 }
 0x3ab   : > { %v533_v48 = vpop.permute.xlu1 %532 }
 0x3ac   : > { %v539_v50 = vsel %vm537_vm5, %v533_v48, 0  ;;  %2033 = vpow2.f32 %v1258_v21 }
 0x3ad   : > { %1786 = vmatpush3.bf16.msra.mxu1 %v539_v50 }
 0x3ae   : > { %1797 = vmatprep.subr.bf16.mxu1 %v2300_v0 }
 0x3b2   : > { %v2748_v60 = vpop.eup %2029 }
 0x3b3   : > { %v2750_v61 = vpop.eup %2031  ;;  %v1014_v62 = vsel %vm516_vm4, %v2748_v60, 0.0 }
 0x3b4   : > { %v1137_v1 = vsel %vm516_vm4, %v2750_v61, 0.0 }
 0x3b6   : > { %v2754_v63 = vpop.eup %2033 }
 0x3b7   : > { %v1260_v2 = vsel %vm516_vm4, %v2754_v63, 0.0 }
 0x3c5   : > { %892 = vadd.xlane.f32.xlu0 %v891_v59 }
 0x3c9   : > { %1015 = vadd.xlane.f32.xlu0 %v1014_v62 }
 0x3cd   : > { %1138 = vadd.xlane.f32.xlu1 %v1137_v1  ;;  %1261 = vadd.xlane.f32.xlu0 %v1260_v2 }
 0x3d4   : > { %v1379_v4 = vpop.xlane.xlu0 %1378 }
 0x3d5   : > { %v1380_v5 = vsub.f32 %v2715_v27, %v1379_v4 }
 0x3d7   : > { %v1381_v6 = vmul.f32 1.442695, %v1380_v5 }
 0x3d9   : > { %2035 = vpow2.f32 %v1381_v6 }
 0x3dc   : > { %v525_v7 = vpop.xlane.xlu1 %524 }
 0x3dd   : > { %2037 = vrcp.f32 %v525_v7 }
 0x3de   : > { %1143 = vrot.lane.b32.xlu1 %v2656_v23, %s2313_s13  ;;  %s1508_s13 = scalar_lea.sflag [#allocation6], %s2597_s14 }
 0x3e2   : > { %1266 = vrot.lane.b32.xlu1 %v2660_v24, %s2314_s3  ;;  %s2197_s3 = scalar_lea.vmem %s2821_s4, 128 }
 0x3e3   : > { %v2763_v8 = vpop.eup %2035  ;;  %p2198_p0 = scmp.ne.s32.totalorder %s2821_s4, %s2197_s3 }
 0x3e4   : > { %v1383_v9 = vsel %vm516_vm4, %v2763_v8, 0.0 }
 0x3e5   : > { %1384 = vadd.xlane.f32.xlu0 %v1383_v9  ;;  %p2199_p4 = pnand %p2198_p0, %p2901_p2 }
 0x3e6   : > { %1389 = vrot.lane.b32.xlu1 %v2663_v25, %s2315_s25  ;;  %s2201_s25 = sshll.u32 %s2324_s21, 4  ;;  %s2202_s25 = int_to_ptr.vmem [resolvable:$false] %s2201_s25 }
 0x3e7   : > { %v2038_v10 = vpop.eup %2037  ;;  %p2200_p8 = pneg %p2199_p4  ;;  %p2204_p1 = scmp.lt.s32.totalorder %s2821_s4, %s2202_s25 }
 0x3e8   : > { %v527_v11 = vmul.f32 %v2038_v10, %v2724_v36 }
 0x3ea   : > { %v528_v12 = vpack.c.bf16 %v527_v11, %v527_v11 }
 0x3ec   : > { %1788 = vmatmul.mubr.msk.bf16.vlgmr.msra.gmra.mrb[4].mxu1 %vm516_vm4, %v528_v12 }
 0x3ed   : > { %1798 = vmatpush3.bf16.msra.mxu1 %v657_v13  ;;  %1799 = vmatprep.mubr.msk.bf16.mxu1 %vm2301_vm0, %v2300_v0 }
 0x3ee   : > { %1809 = vmatprep.subr.bf16.mxu1 %v2300_v0 }
 0x3fb   : > { %1020 = vrot.lane.b32.xlu0 %v2653_v22, %s2316_s8  ;;  %s2203_s8 = scalar_lea.vmem %s2202_s25, 256 }
 0x3fc   : > { %p2205_p13 = scmp.lt.s32.totalorder %s2203_s8, %s2197_s3 }
 0x3fe   : > { %p2206_p3 = por %p2205_p13, %p2204_p1 }
 0x400   : > { %p2207_p5 = pnand %p2206_p3, %p2200_p8 }
 0x41d   : > { %v647_v23 = vpop.xlane.xlu0 %646 }
 0x41e   : > { %2039 = vrcp.f32 %v647_v23 }
 0x421   : > { %v775_v15 = vpop.permute.xlu0 %774 }
 0x422   : > { %v780_v20 = vsel %vm537_vm5, %v775_v15, 0 }
 0x425   : > { %v770_v24 = vpop.xlane.xlu1 %769 }
 0x426   : > { %2041 = vrcp.f32 %v770_v24 }
 0x428   : > { %v2040_v25 = vpop.eup %2039 }
 0x429   : > { %v649_v14 = vmul.f32 %v2040_v25, %v2728_v42  ;;  %v898_v27 = vpop.permute.xlu1 %897 }
 0x42a   : > { %v903_v29 = vsel %vm537_vm5, %v898_v27, 0  ;;  %v2020_v27 = vld [vmem:[#allocation12 + $0x8] sm:$0xff]  }
 0x42b   : > { %v650_v18 = vpack.c.bf16 %v649_v14, %v649_v14 }
 0x42d   : > { %1800 = vmatmul.mubr.msk.bf16.vlgmr.msra.gmra.mrb[8].mxu1 %vm516_vm4, %v650_v18 }
 0x42e   : > { %1810 = vmatpush3.bf16.msra.mxu1 %v780_v20  ;;  %1811 = vmatprep.mubr.msk.bf16.mxu1 %vm2301_vm0, %v2300_v0 }
 0x42f   : > { %1821 = vmatprep.subr.bf16.mxu1 %v2300_v0 }
 0x430   : > { %v2042_v22 = vpop.eup %2041 }
 0x431   : > { %v772_v26 = vmul.f32 %v2042_v22, %v2732_v44  ;;  %v2019_v22 = vld [vmem:[#allocation12] sm:$0xff]  }
 0x432   : > { %1876 = vmatpush3.bf16.msra.mxu0 %v2019_v22 }
 0x433   : > { %v773_v28 = vpack.c.bf16 %v772_v26, %v772_v26  ;;  %1877 = vmatprep.subr.bf16.mxu0 %v2300_v0 }
 0x435   : > { %1812 = vmatmul.mubr.msk.bf16.vlgmr.msra.gmra.mrb[12].mxu1 %vm516_vm4, %v773_v28 }
 0x436   : > { %1822 = vmatpush3.bf16.msra.mxu1 %v903_v29  ;;  %1823 = vmatprep.mubr.msk.bf16.mxu1 %vm2301_vm0, %v2300_v0 }
 0x437   : > { %1833 = vmatprep.subr.bf16.mxu1 %v2300_v0  ;;  %1878 = vmatpush3.bf16.msra.mxu0 %v2020_v27 }
 0x452   : > { %v893_v30 = vpop.xlane.xlu0 %892 }
 0x453   : > { %2043 = vrcp.f32 %v893_v30 }
 0x456   : > { %v1016_v34 = vpop.xlane.xlu0 %1015 }
 0x457   : > { %2045 = vrcp.f32 %v1016_v34 }
 0x45a   : > { %v1139_v35 = vpop.xlane.xlu1 %1138  ;;  %v1262_v36 = vpop.xlane.xlu0 %1261 }
 0x45b   : > { %2047 = vrcp.f32 %v1139_v35 }
 0x45c   : > { %2049 = vrcp.f32 %v1262_v36 }
 0x45d   : > { %v2044_v31 = vpop.eup %2043 }
 0x45e   : > { %v895_v32 = vmul.f32 %v2044_v31, %v2744_v58  ;;  %v1144_v40 = vpop.permute.xlu1 %1143 }
 0x45f   : > { %v1149_v43 = vsel %vm537_vm5, %v1144_v40, 0 }
 0x460   : > { %v896_v33 = vpack.c.bf16 %v895_v32, %v895_v32 }
 0x461   : > { %v2046_v37 = vpop.eup %2045 }
 0x462   : > { %1824 = vmatmul.mubr.msk.bf16.vlgmr.msra.gmra.mrb[16].mxu1 %vm516_vm4, %v896_v33  ;;  %v1018_v38 = vmul.f32 %v2046_v37, %v2748_v60  ;;  %v1267_v45 = vpop.permute.xlu1 %1266 }
 0x463   : > { %1835 = vmatprep.mubr.msk.bf16.mxu1 %vm2301_vm0, %v2300_v0  ;;  %v1272_v48 = vsel %vm537_vm5, %v1267_v45, 0 }
 0x464   : > { %v1019_v41 = vpack.c.bf16 %v1018_v38, %v1018_v38 }
 0x465   : > { %v2048_v42 = vpop.eup %2047 }
 0x466   : > { %v1141_v44 = vmul.f32 %v2048_v42, %v2750_v61  ;;  %v2050_v47 = vpop.eup %2049  ;;  %v1390_v50 = vpop.permute.xlu1 %1389 }
 0x467   : > { %v1264_v49 = vmul.f32 %v2050_v47, %v2754_v63  ;;  %v1395_v53 = vsel %vm537_vm5, %v1390_v50, 0 }
 0x468   : > { %v1142_v46 = vpack.c.bf16 %v1141_v44, %v1141_v44 }
 0x469   : > { %v1265_v51 = vpack.c.bf16 %v1264_v49, %v1264_v49 }
 0x472   : > { %v1385_v19 = vpop.xlane.xlu0 %1384 }
 0x473   : > { %2051 = vrcp.f32 %v1385_v19 }
 0x476   : > { %v1021_v39 = vpop.permute.xlu0 %1020 }
 0x477   : > { %v1026_v16 = vsel %vm537_vm5, %v1021_v39, 0 }
 0x478   : > { %1834 = vmatpush3.bf16.msra.mxu1 %v1026_v16 }
 0x479   : > { %1845 = vmatprep.subr.bf16.mxu1 %v2300_v0 }
 0x47b   : > { %1836 = vmatmul.mubr.msk.bf16.vlgmr.msra.gmra.mrb[20].mxu1 %vm516_vm4, %v1019_v41 }
 0x47c   : > { %1846 = vmatpush3.bf16.msra.mxu1 %v1149_v43  ;;  %1847 = vmatprep.mubr.msk.bf16.mxu1 %vm2301_vm0, %v2300_v0 }
 0x47d   : > { %1857 = vmatprep.subr.bf16.mxu1 %v2300_v0  ;;  %v2052_v52 = vpop.eup %2051 }
 0x47e   : > { %v1387_v54 = vmul.f32 %v2052_v52, %v2763_v8 }
 0x480   : > { %v1388_v55 = vpack.c.bf16 %v1387_v54, %v1387_v54 }
 0x483   : > { %1848 = vmatmul.mubr.msk.bf16.vlgmr.msra.gmra.mrb[24].mxu1 %vm516_vm4, %v1142_v46 }
 0x484   : > { %1858 = vmatpush3.bf16.msra.mxu1 %v1272_v48  ;;  %1859 = vmatprep.mubr.msk.bf16.mxu1 %vm2301_vm0, %v2300_v0 }
 0x485   : > { %1869 = vmatprep.subr.bf16.mxu1 %v2300_v0 }
 0x48b   : > { %1860 = vmatmul.mubr.msk.bf16.vlgmr.msra.gmra.mrb[28].mxu1 %vm516_vm4, %v1265_v51 }
 0x48c   : > { %1870 = vmatpush3.bf16.msra.mxu1 %v1395_v53  ;;  %1871 = vmatprep.mubr.msk.bf16.mxu1 %vm2301_vm0, %v2300_v0 }
 0x493   : > { %1872 = vmatmul.mubr.msk.bf16.vlgmr.msra.gmra.mrb[32].mxu1 %vm516_vm4, %v1388_v55 }
 0x4bf   : > { %v575_v17 = vpop.f32.mrb[4].mxu1 }
 0x4c0   : > { %v581_v56 = vpack.c.bf16 %v575_v17, %v575_v17  ;;  %v1789_v57 = vpop.f32.mrb[5].mxu1 }
 0x4c1   : > { %v578_v21 = vpop.f32.mrb[6].mxu1 }
 0x4c2   : > { %583 = vst.msk [vmem:[#allocation3] sm:$0xf] %vm582_vm6, %v581_v56  ;;  %v1790_v58 = vpop.f32.mrb[7].mxu1 }
 0x500   : > { %v693_v59 = vpop.f32.mrb[8].mxu1 }
 0x501   : > { %v1715_v60 = vpack.c.bf16 %v693_v59, %v693_v59  ;;  %v1801_v61 = vpop.f32.mrb[9].mxu1 }
 0x502   : > { %v696_v62 = vpop.f32.mrb[10].mxu1 }
 0x503   : > { %703 = vrot.lane.b32.xlu1 %v1715_v60, %s2317_s30  ;;  %v1802_v63 = vpop.f32.mrb[11].mxu1 }
 0x508   : > { %v816_v1 = vpop.f32.mrb[12].mxu1 }
 0x509   : > { %v1716_v2 = vpack.c.bf16 %v816_v1, %v816_v1  ;;  %v1813_v3 = vpop.f32.mrb[13].mxu1 }
 0x50a   : > { %v819_v4 = vpop.f32.mrb[14].mxu1 }
 0x50b   : > { %826 = vrot.lane.b32.xlu1 %v1716_v2, %s2318_s16  ;;  %v1814_v5 = vpop.f32.mrb[15].mxu1 }
 0x535   : > { %v939_v6 = vpop.f32.mrb[16].mxu1 }
 0x536   : > { %v1717_v7 = vpack.c.bf16 %v939_v6, %v939_v6  ;;  %v1825_v8 = vpop.f32.mrb[17].mxu1 }
 0x537   : > { %v942_v9 = vpop.f32.mrb[18].mxu1 }
 0x538   : > { %949 = vrot.lane.b32.xlu0 %v1717_v7, %s2319_s28  ;;  %v1826_v10 = vpop.f32.mrb[19].mxu1 }
 0x54e   : > { %v1062_v11 = vpop.f32.mrb[20].mxu1 }
 0x54f   : > { %v1718_v12 = vpack.c.bf16 %v1062_v11, %v1062_v11  ;;  %v1837_v13 = vpop.f32.mrb[21].mxu1 }
 0x550   : > { %v1065_v23 = vpop.f32.mrb[22].mxu1 }
 0x551   : > { %1072 = vrot.lane.b32.xlu1 %v1718_v12, %s2320_s24  ;;  %v1838_v24 = vpop.f32.mrb[23].mxu1 }
 0x556   : > { %v1185_v25 = vpop.f32.mrb[24].mxu1 }
 0x557   : > { %v1719_v14 = vpack.c.bf16 %v1185_v25, %v1185_v25  ;;  %v1849_v15 = vpop.f32.mrb[25].mxu1 }
 0x558   : > { %v1188_v18 = vpop.f32.mrb[26].mxu1 }
 0x559   : > { %1195 = vrot.lane.b32.xlu0 %v1719_v14, %s2321_s26  ;;  %v1850_v20 = vpop.f32.mrb[27].mxu1 }
 0x55e   : > { %v1308_v26 = vpop.f32.mrb[28].mxu1 }
 0x55f   : > { %v1720_v28 = vpack.c.bf16 %v1308_v26, %v1308_v26  ;;  %v1861_v29 = vpop.f32.mrb[29].mxu1 }
 0x560   : > { %v1311_v30 = vpop.f32.mrb[30].mxu1 }
 0x561   : > { %1318 = vrot.lane.b32.xlu1 %v1720_v28, %s2322_s27  ;;  %v1862_v31 = vpop.f32.mrb[31].mxu1 }
 0x566   : > { %v1431_v32 = vpop.f32.mrb[32].mxu1 }
 0x567   : > { %v1721_v33 = vpack.c.bf16 %v1431_v32, %v1431_v32  ;;  %v1873_v34 = vpop.f32.mrb[33].mxu1 }
 0x568   : > { %v1434_v35 = vpop.f32.mrb[34].mxu1 }
 0x569   : > { %1441 = vrot.lane.b32.xlu0 %v1721_v33, %s2323_s15  ;;  %v1874_v36 = vpop.f32.mrb[35].mxu1 }
 0x575   : > { %v704_v37 = vpop.permute.xlu1 %703 }
 0x576   : > { %707 = vst.msk [vmem:[#allocation3] sm:$0xf] %vm706_vm7, %v704_v37 }
 0x57d   : > { %v827_v19 = vpop.permute.xlu1 %826 }
 0x57e   : > { %830 = vst.msk [vmem:[#allocation3] sm:$0xf] %vm829_vm8, %v827_v19 }
 0x5aa   : > { %v950_v0 = vpop.permute.xlu0 %949 }
 0x5ab   : > { %953 = vst.msk [vmem:[#allocation3] sm:$0xf] %vm952_vm9, %v950_v0 }
 0x5c3   : > { %v1073_v38 = vpop.permute.xlu1 %1072 }
 0x5c4   : > { %1076 = vst.msk [vmem:[#allocation3] sm:$0xf] %vm1075_vm10, %v1073_v38 }
 0x5cb   : > { %v1196_v39 = vpop.permute.xlu0 %1195 }
 0x5cc   : > { %1199 = vst.msk [vmem:[#allocation3] sm:$0xf] %vm1198_vm11, %v1196_v39 }
 0x5d3   : > { %v1319_v16 = vpop.permute.xlu1 %1318 }
 0x5d4   : > { %1322 = vst.msk [vmem:[#allocation3] sm:$0xf] %vm1321_vm12, %v1319_v16 }
 0x5db   : > { %v1442_v40 = vpop.permute.xlu0 %1441 }
 0x5dc   : > { %1445 = vst.msk [vmem:[#allocation3] sm:$0xf] %vm1444_vm13, %v1442_v40 }
 0x5e3   : > { %v1446_v41 = vld [vmem:[#allocation3] sm:$0xf] }
 0x5e4   : > { %1880 = vmatmul.mubr.msk.bf16.vlgmr.msra.gmra.mrb[36].mxu0 %vm359_vm1, %v1446_v41 }
 0x6b7   : > { %v1500_v42 = vpop.f32.mrb[36].mxu0 }
 0x6b8   : > { %1506 = vst.msk [vmem:[%s336_s7] sm:$0xff] %vm359_vm1, %v1500_v42  ;;  %v1881_v43 = vpop.f32.mrb[37].mxu0 }
 0x6b9   : > { %v1503_v44 = vpop.f32.mrb[38].mxu0 }
 0x6ba   : > { %2210 = shalt.err (!%p2207_p5)
}
 0x6bb   : > { %s2211_s14 = scalar_lea.hbm %s2819_s29, 128  ;;  %s2215_s28 = scalar_lea.hbm %s2874_s5, 256 }
 0x6bc   : > { %p2212_p6 = scmp.ne.s32.totalorder %s2819_s29, %s2211_s14  ;;  %p2216_p7 = scmp.lt.u32.totalorder %s2819_s29, %s2874_s5 }
 0x6bd   : > { %p2217_p11 = scmp.lt.u32.totalorder %s2215_s28, %s2211_s14  ;;  %p2219_p0 = scmp.lt.u32.totalorder %s2211_s14, %s2819_s29 }
 0x6be   : > { %p2213_p12 = pnand %p2212_p6, %p2901_p2 }
 0x6bf   : > { %p2218_p9 = por %p2217_p11, %p2216_p7 }
 0x6c0   : > { %p2214_p10 = pneg %p2213_p12 }
 0x6c1   : > { %p2220_p4 = por %p2219_p0, %p2218_p9 }
 0x6c3   : > { %p2221_p8 = pnand %p2220_p4, %p2214_p10 }
 0x6c5   : > { %2224 = shalt.err (!%p2221_p8)
}
 0x6c6   : > { %1899 = dma.vmem_to_hbm [thread:$0]  (%p2901_p2), %s2821_s4, 128, %s2819_s29, %s1508_s13   ;;  %v1882_v45 = vpop.f32.mrb[39].mxu0 }
 0x6c7 PF: > { %s2902_s27 = sld [smem:[#allocation19_spill]]  ;;  %s1534_s15 = sand.u32 1, %s2271_s18  }
 0x6c8   : > { %p2904_p13 = scmp.ge.s32.totalorder %s2291_s23, 2  ;;  %s1535_s12 = scalar_lea.sflag [#allocation6], %s1534_s15 }
 0x6cd   : > { %p2903_p1 = scmp.ne.s32.totalorder %s2902_s27, 0 }
 0x6cf   : > { %p1919_p3 = pnand %p2904_p13, %p2903_p1 }
 0x6d1   : > { %2266 = dma.done.wait (!%p1919_p3), %s1535_s12, 128  }
 0x6d2   : > { %2268 = vsyncadd (!%p1919_p3), %s1535_s12, 4294967168  ;;  %s25_s23 = sadd.s32 1, %s2291_s23   ;;  %s2905_s18 = smov %s2275_s19 }
 0x6d3   : > { %p22_p5 = scmp.ge.s32.totalorder %s25_s23, 4   ;;  %s2906_s19 = smov %s2279_s20 }
 0x6d4   : > { %s2907_s20 = smov %s2525_s9  ;;  %s2908_s21 = smov %s2287_s22 }
 0x6d5   : > { %s2909_s22 = smov %s2911_s6  ;;  %24 = sbr.rel (!%p22_p5) target bundleno = 13 (0xd), region = 114 }
 0x6dc   :  { %1540 = vsyncpa [#allocation5], 1 }
 0x6dd   :  { %1542 = vsyncpa [#allocation5 + $0x1], 1 }
 0x6de   :  { %1543 = vsyncpa [#allocation8], 1 }
 0x6df   :  { %1545 = vsyncpa [#allocation8 + $0x1], 1 }
 0x6e0   :  { %1546 = vsyncpa [#allocation11], 1 }
 0x6e1   :  { %1547 = vsyncpa [#allocation6], 1 }
 0x6e2   :  { %1549 = vsyncpa [#allocation6 + $0x1], 1 }

</bundles_post_ra>
